<compile_context>
chip_gen: v6e
topology: v6e:2x2x1
jax: 0.10.0
libtpu: 0.0.40
codegen_flags: <defaults>
</compile_context>

<pallas_src>
import functools

import jax
import jax.numpy as jnp
from jax import lax
from jax.experimental import pallas as pl
from jax.experimental.pallas import tpu as pltpu

N_FEATURES = 4     # num_features (small for the example)
KSIZE = 7          # kernel_size
PAD = KSIZE // 2
EPS = 1e-5
LANE = 128


def xunit_kernel(xp_ref, mask_ref, w_ref, s1_ref, t1_ref, b2_ref, o_ref,
                 *, wp, lp, ksize):
    """One row = one (batch, channel) image, zero-padded and flattened on lanes.

    xp_ref  : (BR, Lp)  raw x, spatially zero-padded, row-major flattened with
                        row stride `wp`, lane-padded to Lp.
    mask_ref: (1, Lp)   1.0 at valid (non-padding) positions, else 0.0.
    w_ref   : (BR, K*K) depthwise conv weights per row (BN2 scale folded in).
    s1_ref  : (BR, 1)   folded BN1 scale per row.
    t1_ref  : (BR, 1)   folded BN1 shift per row.
    b2_ref  : (BR, 1)   conv bias with BN2 folded in.
    o_ref   : (BR, Lp)  gated output, same layout as xp (padding discarded by
                        the wrapper).
    """
    pad = ksize // 2
    xp = xp_ref[...]
    w = w_ref[...]                     # loaded once, indexed per tap

    # BN1 (eval mode, folded) + ReLU.  The mask re-zeroes the padding ring so
    # it matches nn.Conv2d's implicit zero padding of the BN+ReLU output.
    a = jnp.maximum(xp * s1_ref[...] + t1_ref[...], 0.0) * mask_ref[...]

    # Depthwise KxK cross-correlation.  Tap (dy, dx) of the padded image is a
    # flat shift of (dy-pad)*wp + (dx-pad) relative to the output position;
    # aligned lane rotations (XLU slot) keep every FMA vreg-dense.  Wrapped
    # lanes only ever land on padding positions, which are discarded.
    acc = None
    for dy in range(ksize):
        for dx in range(ksize):
            t = dy * ksize + dx
            s = (dy - pad) * wp + (dx - pad)
            shifted = a if s == 0 else pltpu.roll(a, shift=(-s) % lp, axis=1)
            term = shifted * w[:, t:t + 1]
            acc = term if acc is None else acc + term

    # Folded BN2 + sigmoid gate (EUP), then gate the *original* input.
    gate = jax.nn.sigmoid(acc + b2_ref[...])
    o_ref[...] = (xp * gate).astype(o_ref.dtype)


def _pick_row_block(nc, bytes_per_row):
    """Rows per grid step.

    Fuse everything into one step when tiny (per-step pipeline overhead
    ~0.35us dominates), keep >= 2 "parallel" steps when there is enough work
    to shard across v7x's two TensorCores, and cap the block so the
    double-buffered in/out tiles stay far inside scoped VMEM on every
    generation (v5e/v6e: 128 MiB physical, v7x: 64 MiB).
    """
    if nc % 8 != 0:
        return nc                                          # single fused block
    budget_rows = max(8, (4 << 20) // bytes_per_row)       # ~4 MiB per block
    divisors = [d for d in range(8, nc + 1, 8) if nc % d == 0]
    fitting = [d for d in divisors if d <= budget_rows] or divisors[:1]
    if nc >= 16:                                           # feed both v7x TCs
        halved = [d for d in fitting if d <= nc // 2]
        if halved:
            fitting = halved
    return max(fitting)


@jax.jit
def xunit_forward(x, conv_w, conv_b, bn1, bn2):
    """xUnit forward.  x: (N, C, H, W) f32; conv_w: (C, 1, K, K) (PyTorch
    depthwise layout); conv_b: (C,); bn1/bn2: (gamma, beta, mean, var)."""
    N, C, H, W = x.shape
    K = conv_w.shape[-1]
    P = K // 2
    Hp, Wp = H + 2 * P, W + 2 * P
    L = Hp * Wp
    Lp = ((L + LANE - 1) // LANE) * LANE
    NC = N * C

    g1, be1, m1, v1 = bn1
    g2, be2, m2, v2 = bn2
    s1 = g1 * lax.rsqrt(v1 + EPS)
    t1 = be1 - m1 * s1
    s2 = g2 * lax.rsqrt(v2 + EPS)
    t2 = be2 - m2 * s2

    # Fold BN2 into the depthwise conv: w' = w*s2, b' = b*s2 + t2.
    w_eff = conv_w[:, 0, :, :] * s2[:, None, None]             # (C, K, K)
    b_eff = conv_b * s2 + t2                                    # (C,)

    # Lane-dense layout: zero-pad spatially, flatten (Hp, Wp) onto lanes,
    # one row per (batch, channel).  No NCHW<->NHWC transpose anywhere.
    xp = jnp.pad(x, ((0, 0), (0, 0), (P, P), (P, P))).reshape(NC, L)
    xp = jnp.pad(xp, ((0, 0), (0, Lp - L)))                     # (NC, Lp)
    mask = jnp.pad(jnp.ones((H, W), x.dtype), ((P, P), (P, P))).reshape(1, L)
    mask = jnp.pad(mask, ((0, 0), (0, Lp - L)))                 # (1, Lp)

    w_rows = jnp.tile(w_eff.reshape(C, K * K), (N, 1))          # (NC, K*K)
    s1_rows = jnp.tile(s1, N)[:, None]                          # (NC, 1)
    t1_rows = jnp.tile(t1, N)[:, None]
    b2_rows = jnp.tile(b_eff, N)[:, None]

    BR = _pick_row_block(NC, Lp * x.dtype.itemsize)
    grid = (NC // BR,)

    kernel = functools.partial(xunit_kernel, wp=Wp, lp=Lp, ksize=K)
    out_flat = pl.pallas_call(
        kernel,
        out_shape=jax.ShapeDtypeStruct((NC, Lp), x.dtype),
        grid_spec=pltpu.PrefetchScalarGridSpec(
            num_scalar_prefetch=0,
            grid=grid,
            in_specs=[
                pl.BlockSpec((BR, Lp), lambda i: (i, 0)),
                pl.BlockSpec((1, Lp), lambda i: (0, 0)),
                pl.BlockSpec((BR, K * K), lambda i: (i, 0)),
                pl.BlockSpec((BR, 1), lambda i: (i, 0)),
                pl.BlockSpec((BR, 1), lambda i: (i, 0)),
                pl.BlockSpec((BR, 1), lambda i: (i, 0)),
            ],
            out_specs=pl.BlockSpec((BR, Lp), lambda i: (i, 0)),
        ),
        compiler_params=pltpu.CompilerParams(
            dimension_semantics=("parallel",)),
    )(xp, mask, w_rows, s1_rows, t1_rows, b2_rows)

    # Drop the padding ring / lane tail and restore (N, C, H, W).
    out = out_flat[:, :L].reshape(N, C, Hp, Wp)[:, :, P:P + H, P:P + W]
    return out


def xunit_reference(x, conv_w, conv_b, bn1, bn2):
    """Pure-JAX NCHW reference of the module forward (eval-mode BatchNorm)."""
    def bn(z, p):
        g, b, m, v = p
        s = (g / jnp.sqrt(v + EPS))[None, :, None, None]
        return (z - m[None, :, None, None]) * s + b[None, :, None, None]

    a = jnp.maximum(bn(x, bn1), 0.0)
    conv = lax.conv_general_dilated(
        a, conv_w, window_strides=(1, 1),
        padding=((PAD, PAD), (PAD, PAD)),
        dimension_numbers=("NCHW", "OIHW", "NCHW"),
        feature_group_count=x.shape[1],
        precision=lax.Precision.HIGHEST) + conv_b[None, :, None, None]
    gate = jax.nn.sigmoid(bn(conv, bn2))
    return x * gate


if __name__ == "__main__":
    N, C, H, W = 2, N_FEATURES, 16, 16
    key = jax.random.PRNGKey(0)
    ks = jax.random.split(key, 12)

    x = jax.random.normal(ks[0], (N, C, H, W), jnp.float32)

    # Deterministic synthetic parameters (shapes per nn.Module __init__).
    gamma1 = 1.0 + 0.1 * jax.random.normal(ks[1], (C,), jnp.float32)
    beta1 = 0.1 * jax.random.normal(ks[2], (C,), jnp.float32)
    mean1 = 0.1 * jax.random.normal(ks[3], (C,), jnp.float32)
    var1 = jax.nn.softplus(jax.random.normal(ks[4], (C,), jnp.float32)) + 0.5
    gamma2 = 1.0 + 0.1 * jax.random.normal(ks[5], (C,), jnp.float32)
    beta2 = 0.1 * jax.random.normal(ks[6], (C,), jnp.float32)
    mean2 = 0.1 * jax.random.normal(ks[7], (C,), jnp.float32)
    var2 = jax.nn.softplus(jax.random.normal(ks[8], (C,), jnp.float32)) + 0.5
    # Conv2d(C, C, k=7, padding=3, groups=C): weight (C, 1, 7, 7), bias (C,).
    conv_w = (1.0 / (KSIZE * KSIZE)) * jax.random.normal(
        ks[9], (C, 1, KSIZE, KSIZE), jnp.float32)
    conv_b = 0.1 * jax.random.normal(ks[10], (C,), jnp.float32)

    bn1 = (gamma1, beta1, mean1, var1)
    bn2 = (gamma2, beta2, mean2, var2)

    out = xunit_forward(x, conv_w, conv_b, bn1, bn2)
    out = jax.block_until_ready(out)

    ref = xunit_reference(x, conv_w, conv_b, bn1, bn2)
    assert out.shape == x.shape
    assert jnp.allclose(out, ref, atol=2e-5, rtol=2e-5), "mismatch vs reference"

    print("KERNEL_OK")
</pallas_src>

<mosaic_0001>
module attributes {stable_mosaic.version = 11 : i64} {
  func.func @xunit_kernel(%arg0: i32, %arg1: memref<8x512xf32, #tpu.memory_space<vmem>>, %arg2: memref<1x512xf32, #tpu.memory_space<vmem>>, %arg3: memref<8x49xf32, #tpu.memory_space<vmem>>, %arg4: memref<8x1xf32, #tpu.memory_space<vmem>>, %arg5: memref<8x1xf32, #tpu.memory_space<vmem>>, %arg6: memref<8x1xf32, #tpu.memory_space<vmem>>, %arg7: memref<8x512xf32, #tpu.memory_space<vmem>>) attributes {dimension_semantics = [#tpu.dimension_semantics<parallel>], iteration_bounds = array<i64: 1>, scalar_prefetch = 0 : i64, scratch_operands = 0 : i64, tpu.core_type = #tpu.core_type<tc>, window_params = [{transform_indices = @transform_0, window_bounds = array<i64: 8, 512>}, {pipeline_mode = #tpu.pipeline_mode<synchronous>, transform_indices = @transform_1, window_bounds = array<i64: 1, 512>}, {transform_indices = @transform_2, window_bounds = array<i64: 8, 49>}, {transform_indices = @transform_3, window_bounds = array<i64: 8, 1>}, {transform_indices = @transform_4, window_bounds = array<i64: 8, 1>}, {transform_indices = @transform_5, window_bounds = array<i64: 8, 1>}, {transform_indices = @transform_6, window_bounds = array<i64: 8, 512>}]} {
    %c0 = arith.constant 0 : index
    %c0_0 = arith.constant 0 : index
    %0 = vector.load %arg1[%c0, %c0_0] : memref<8x512xf32, #tpu.memory_space<vmem>>, vector<8x512xf32>
    %c0_1 = arith.constant 0 : index
    %c0_2 = arith.constant 0 : index
    %1 = vector.load %arg3[%c0_1, %c0_2] : memref<8x49xf32, #tpu.memory_space<vmem>>, vector<8x49xf32>
    %c0_3 = arith.constant 0 : index
    %c0_4 = arith.constant 0 : index
    %2 = vector.load %arg4[%c0_3, %c0_4] : memref<8x1xf32, #tpu.memory_space<vmem>>, vector<8x1xf32>
    %3 = vector.broadcast %2 : vector<8x1xf32> to vector<8x512xf32>
    %4 = arith.mulf %0, %3 : vector<8x512xf32>
    %c0_5 = arith.constant 0 : index
    %c0_6 = arith.constant 0 : index
    %5 = vector.load %arg5[%c0_5, %c0_6] : memref<8x1xf32, #tpu.memory_space<vmem>>, vector<8x1xf32>
    %6 = vector.broadcast %5 : vector<8x1xf32> to vector<8x512xf32>
    %7 = arith.addf %4, %6 : vector<8x512xf32>
    %cst = arith.constant 0.000000e+00 : f32
    %8 = vector.broadcast %cst : f32 to vector<8x512xf32>
    %9 = arith.maximumf %7, %8 : vector<8x512xf32>
    %c0_7 = arith.constant 0 : index
    %c0_8 = arith.constant 0 : index
    %10 = vector.load %arg2[%c0_7, %c0_8] : memref<1x512xf32, #tpu.memory_space<vmem>>, vector<1x512xf32>
    %11 = vector.broadcast %10 : vector<1x512xf32> to vector<8x512xf32>
    %12 = arith.mulf %9, %11 : vector<8x512xf32>
    %c69_i32 = arith.constant 69 : i32
    %13 = tpu.dynamic_rotate %12 by %c69_i32 dim 1 : vector<8x512xf32>, i32 -> vector<8x512xf32>
    %14 = vector.extract_strided_slice %1 {offsets = [0, 0], sizes = [8, 1], strides = [1, 1]} : vector<8x49xf32> to vector<8x1xf32>
    %15 = vector.broadcast %14 : vector<8x1xf32> to vector<8x512xf32>
    %16 = arith.mulf %13, %15 : vector<8x512xf32>
    %c68_i32 = arith.constant 68 : i32
    %17 = tpu.dynamic_rotate %12 by %c68_i32 dim 1 : vector<8x512xf32>, i32 -> vector<8x512xf32>
    %18 = vector.extract_strided_slice %1 {offsets = [0, 1], sizes = [8, 1], strides = [1, 1]} : vector<8x49xf32> to vector<8x1xf32>
    %19 = vector.broadcast %18 : vector<8x1xf32> to vector<8x512xf32>
    %20 = arith.mulf %17, %19 : vector<8x512xf32>
    %21 = arith.addf %16, %20 : vector<8x512xf32>
    %c67_i32 = arith.constant 67 : i32
    %22 = tpu.dynamic_rotate %12 by %c67_i32 dim 1 : vector<8x512xf32>, i32 -> vector<8x512xf32>
    %23 = vector.extract_strided_slice %1 {offsets = [0, 2], sizes = [8, 1], strides = [1, 1]} : vector<8x49xf32> to vector<8x1xf32>
    %24 = vector.broadcast %23 : vector<8x1xf32> to vector<8x512xf32>
    %25 = arith.mulf %22, %24 : vector<8x512xf32>
    %26 = arith.addf %21, %25 : vector<8x512xf32>
    %c66_i32 = arith.constant 66 : i32
    %27 = tpu.dynamic_rotate %12 by %c66_i32 dim 1 : vector<8x512xf32>, i32 -> vector<8x512xf32>
    %28 = vector.extract_strided_slice %1 {offsets = [0, 3], sizes = [8, 1], strides = [1, 1]} : vector<8x49xf32> to vector<8x1xf32>
    %29 = vector.broadcast %28 : vector<8x1xf32> to vector<8x512xf32>
    %30 = arith.mulf %27, %29 : vector<8x512xf32>
    %31 = arith.addf %26, %30 : vector<8x512xf32>
    %c65_i32 = arith.constant 65 : i32
    %32 = tpu.dynamic_rotate %12 by %c65_i32 dim 1 : vector<8x512xf32>, i32 -> vector<8x512xf32>
    %33 = vector.extract_strided_slice %1 {offsets = [0, 4], sizes = [8, 1], strides = [1, 1]} : vector<8x49xf32> to vector<8x1xf32>
    %34 = vector.broadcast %33 : vector<8x1xf32> to vector<8x512xf32>
    %35 = arith.mulf %32, %34 : vector<8x512xf32>
    %36 = arith.addf %31, %35 : vector<8x512xf32>
    %c64_i32 = arith.constant 64 : i32
    %37 = tpu.dynamic_rotate %12 by %c64_i32 dim 1 : vector<8x512xf32>, i32 -> vector<8x512xf32>
    %38 = vector.extract_strided_slice %1 {offsets = [0, 5], sizes = [8, 1], strides = [1, 1]} : vector<8x49xf32> to vector<8x1xf32>
    %39 = vector.broadcast %38 : vector<8x1xf32> to vector<8x512xf32>
    %40 = arith.mulf %37, %39 : vector<8x512xf32>
    %41 = arith.addf %36, %40 : vector<8x512xf32>
    %c63_i32 = arith.constant 63 : i32
    %42 = tpu.dynamic_rotate %12 by %c63_i32 dim 1 : vector<8x512xf32>, i32 -> vector<8x512xf32>
    %43 = vector.extract_strided_slice %1 {offsets = [0, 6], sizes = [8, 1], strides = [1, 1]} : vector<8x49xf32> to vector<8x1xf32>
    %44 = vector.broadcast %43 : vector<8x1xf32> to vector<8x512xf32>
    %45 = arith.mulf %42, %44 : vector<8x512xf32>
    %46 = arith.addf %41, %45 : vector<8x512xf32>
    %c47_i32 = arith.constant 47 : i32
    %47 = tpu.dynamic_rotate %12 by %c47_i32 dim 1 : vector<8x512xf32>, i32 -> vector<8x512xf32>
    %48 = vector.extract_strided_slice %1 {offsets = [0, 7], sizes = [8, 1], strides = [1, 1]} : vector<8x49xf32> to vector<8x1xf32>
    %49 = vector.broadcast %48 : vector<8x1xf32> to vector<8x512xf32>
    %50 = arith.mulf %47, %49 : vector<8x512xf32>
    %51 = arith.addf %46, %50 : vector<8x512xf32>
    %c46_i32 = arith.constant 46 : i32
    %52 = tpu.dynamic_rotate %12 by %c46_i32 dim 1 : vector<8x512xf32>, i32 -> vector<8x512xf32>
    %53 = vector.extract_strided_slice %1 {offsets = [0, 8], sizes = [8, 1], strides = [1, 1]} : vector<8x49xf32> to vector<8x1xf32>
    %54 = vector.broadcast %53 : vector<8x1xf32> to vector<8x512xf32>
    %55 = arith.mulf %52, %54 : vector<8x512xf32>
    %56 = arith.addf %51, %55 : vector<8x512xf32>
    %c45_i32 = arith.constant 45 : i32
    %57 = tpu.dynamic_rotate %12 by %c45_i32 dim 1 : vector<8x512xf32>, i32 -> vector<8x512xf32>
    %58 = vector.extract_strided_slice %1 {offsets = [0, 9], sizes = [8, 1], strides = [1, 1]} : vector<8x49xf32> to vector<8x1xf32>
    %59 = vector.broadcast %58 : vector<8x1xf32> to vector<8x512xf32>
    %60 = arith.mulf %57, %59 : vector<8x512xf32>
    %61 = arith.addf %56, %60 : vector<8x512xf32>
    %c44_i32 = arith.constant 44 : i32
    %62 = tpu.dynamic_rotate %12 by %c44_i32 dim 1 : vector<8x512xf32>, i32 -> vector<8x512xf32>
    %63 = vector.extract_strided_slice %1 {offsets = [0, 10], sizes = [8, 1], strides = [1, 1]} : vector<8x49xf32> to vector<8x1xf32>
    %64 = vector.broadcast %63 : vector<8x1xf32> to vector<8x512xf32>
    %65 = arith.mulf %62, %64 : vector<8x512xf32>
    %66 = arith.addf %61, %65 : vector<8x512xf32>
    %c43_i32 = arith.constant 43 : i32
    %67 = tpu.dynamic_rotate %12 by %c43_i32 dim 1 : vector<8x512xf32>, i32 -> vector<8x512xf32>
    %68 = vector.extract_strided_slice %1 {offsets = [0, 11], sizes = [8, 1], strides = [1, 1]} : vector<8x49xf32> to vector<8x1xf32>
    %69 = vector.broadcast %68 : vector<8x1xf32> to vector<8x512xf32>
    %70 = arith.mulf %67, %69 : vector<8x512xf32>
    %71 = arith.addf %66, %70 : vector<8x512xf32>
    %c42_i32 = arith.constant 42 : i32
    %72 = tpu.dynamic_rotate %12 by %c42_i32 dim 1 : vector<8x512xf32>, i32 -> vector<8x512xf32>
    %73 = vector.extract_strided_slice %1 {offsets = [0, 12], sizes = [8, 1], strides = [1, 1]} : vector<8x49xf32> to vector<8x1xf32>
    %74 = vector.broadcast %73 : vector<8x1xf32> to vector<8x512xf32>
    %75 = arith.mulf %72, %74 : vector<8x512xf32>
    %76 = arith.addf %71, %75 : vector<8x512xf32>
    %c41_i32 = arith.constant 41 : i32
    %77 = tpu.dynamic_rotate %12 by %c41_i32 dim 1 : vector<8x512xf32>, i32 -> vector<8x512xf32>
    %78 = vector.extract_strided_slice %1 {offsets = [0, 13], sizes = [8, 1], strides = [1, 1]} : vector<8x49xf32> to vector<8x1xf32>
    %79 = vector.broadcast %78 : vector<8x1xf32> to vector<8x512xf32>
    %80 = arith.mulf %77, %79 : vector<8x512xf32>
    %81 = arith.addf %76, %80 : vector<8x512xf32>
    %c25_i32 = arith.constant 25 : i32
    %82 = tpu.dynamic_rotate %12 by %c25_i32 dim 1 : vector<8x512xf32>, i32 -> vector<8x512xf32>
    %83 = vector.extract_strided_slice %1 {offsets = [0, 14], sizes = [8, 1], strides = [1, 1]} : vector<8x49xf32> to vector<8x1xf32>
    %84 = vector.broadcast %83 : vector<8x1xf32> to vector<8x512xf32>
    %85 = arith.mulf %82, %84 : vector<8x512xf32>
    %86 = arith.addf %81, %85 : vector<8x512xf32>
    %c24_i32 = arith.constant 24 : i32
    %87 = tpu.dynamic_rotate %12 by %c24_i32 dim 1 : vector<8x512xf32>, i32 -> vector<8x512xf32>
    %88 = vector.extract_strided_slice %1 {offsets = [0, 15], sizes = [8, 1], strides = [1, 1]} : vector<8x49xf32> to vector<8x1xf32>
    %89 = vector.broadcast %88 : vector<8x1xf32> to vector<8x512xf32>
    %90 = arith.mulf %87, %89 : vector<8x512xf32>
    %91 = arith.addf %86, %90 : vector<8x512xf32>
    %c23_i32 = arith.constant 23 : i32
    %92 = tpu.dynamic_rotate %12 by %c23_i32 dim 1 : vector<8x512xf32>, i32 -> vector<8x512xf32>
    %93 = vector.extract_strided_slice %1 {offsets = [0, 16], sizes = [8, 1], strides = [1, 1]} : vector<8x49xf32> to vector<8x1xf32>
    %94 = vector.broadcast %93 : vector<8x1xf32> to vector<8x512xf32>
    %95 = arith.mulf %92, %94 : vector<8x512xf32>
    %96 = arith.addf %91, %95 : vector<8x512xf32>
    %c22_i32 = arith.constant 22 : i32
    %97 = tpu.dynamic_rotate %12 by %c22_i32 dim 1 : vector<8x512xf32>, i32 -> vector<8x512xf32>
    %98 = vector.extract_strided_slice %1 {offsets = [0, 17], sizes = [8, 1], strides = [1, 1]} : vector<8x49xf32> to vector<8x1xf32>
    %99 = vector.broadcast %98 : vector<8x1xf32> to vector<8x512xf32>
    %100 = arith.mulf %97, %99 : vector<8x512xf32>
    %101 = arith.addf %96, %100 : vector<8x512xf32>
    %c21_i32 = arith.constant 21 : i32
    %102 = tpu.dynamic_rotate %12 by %c21_i32 dim 1 : vector<8x512xf32>, i32 -> vector<8x512xf32>
    %103 = vector.extract_strided_slice %1 {offsets = [0, 18], sizes = [8, 1], strides = [1, 1]} : vector<8x49xf32> to vector<8x1xf32>
    %104 = vector.broadcast %103 : vector<8x1xf32> to vector<8x512xf32>
    %105 = arith.mulf %102, %104 : vector<8x512xf32>
    %106 = arith.addf %101, %105 : vector<8x512xf32>
    %c20_i32 = arith.constant 20 : i32
    %107 = tpu.dynamic_rotate %12 by %c20_i32 dim 1 : vector<8x512xf32>, i32 -> vector<8x512xf32>
    %108 = vector.extract_strided_slice %1 {offsets = [0, 19], sizes = [8, 1], strides = [1, 1]} : vector<8x49xf32> to vector<8x1xf32>
    %109 = vector.broadcast %108 : vector<8x1xf32> to vector<8x512xf32>
    %110 = arith.mulf %107, %109 : vector<8x512xf32>
    %111 = arith.addf %106, %110 : vector<8x512xf32>
    %c19_i32 = arith.constant 19 : i32
    %112 = tpu.dynamic_rotate %12 by %c19_i32 dim 1 : vector<8x512xf32>, i32 -> vector<8x512xf32>
    %113 = vector.extract_strided_slice %1 {offsets = [0, 20], sizes = [8, 1], strides = [1, 1]} : vector<8x49xf32> to vector<8x1xf32>
    %114 = vector.broadcast %113 : vector<8x1xf32> to vector<8x512xf32>
    %115 = arith.mulf %112, %114 : vector<8x512xf32>
    %116 = arith.addf %111, %115 : vector<8x512xf32>
    %c3_i32 = arith.constant 3 : i32
    %117 = tpu.dynamic_rotate %12 by %c3_i32 dim 1 : vector<8x512xf32>, i32 -> vector<8x512xf32>
    %118 = vector.extract_strided_slice %1 {offsets = [0, 21], sizes = [8, 1], strides = [1, 1]} : vector<8x49xf32> to vector<8x1xf32>
    %119 = vector.broadcast %118 : vector<8x1xf32> to vector<8x512xf32>
    %120 = arith.mulf %117, %119 : vector<8x512xf32>
    %121 = arith.addf %116, %120 : vector<8x512xf32>
    %c2_i32 = arith.constant 2 : i32
    %122 = tpu.dynamic_rotate %12 by %c2_i32 dim 1 : vector<8x512xf32>, i32 -> vector<8x512xf32>
    %123 = vector.extract_strided_slice %1 {offsets = [0, 22], sizes = [8, 1], strides = [1, 1]} : vector<8x49xf32> to vector<8x1xf32>
    %124 = vector.broadcast %123 : vector<8x1xf32> to vector<8x512xf32>
    %125 = arith.mulf %122, %124 : vector<8x512xf32>
    %126 = arith.addf %121, %125 : vector<8x512xf32>
    %c1_i32 = arith.constant 1 : i32
    %127 = tpu.dynamic_rotate %12 by %c1_i32 dim 1 : vector<8x512xf32>, i32 -> vector<8x512xf32>
    %128 = vector.extract_strided_slice %1 {offsets = [0, 23], sizes = [8, 1], strides = [1, 1]} : vector<8x49xf32> to vector<8x1xf32>
    %129 = vector.broadcast %128 : vector<8x1xf32> to vector<8x512xf32>
    %130 = arith.mulf %127, %129 : vector<8x512xf32>
    %131 = arith.addf %126, %130 : vector<8x512xf32>
    %132 = vector.extract_strided_slice %1 {offsets = [0, 24], sizes = [8, 1], strides = [1, 1]} : vector<8x49xf32> to vector<8x1xf32>
    %133 = vector.broadcast %132 : vector<8x1xf32> to vector<8x512xf32>
    %134 = arith.mulf %12, %133 : vector<8x512xf32>
    %135 = arith.addf %131, %134 : vector<8x512xf32>
    %c511_i32 = arith.constant 511 : i32
    %136 = tpu.dynamic_rotate %12 by %c511_i32 dim 1 : vector<8x512xf32>, i32 -> vector<8x512xf32>
    %137 = vector.extract_strided_slice %1 {offsets = [0, 25], sizes = [8, 1], strides = [1, 1]} : vector<8x49xf32> to vector<8x1xf32>
    %138 = vector.broadcast %137 : vector<8x1xf32> to vector<8x512xf32>
    %139 = arith.mulf %136, %138 : vector<8x512xf32>
    %140 = arith.addf %135, %139 : vector<8x512xf32>
    %c510_i32 = arith.constant 510 : i32
    %141 = tpu.dynamic_rotate %12 by %c510_i32 dim 1 : vector<8x512xf32>, i32 -> vector<8x512xf32>
    %142 = vector.extract_strided_slice %1 {offsets = [0, 26], sizes = [8, 1], strides = [1, 1]} : vector<8x49xf32> to vector<8x1xf32>
    %143 = vector.broadcast %142 : vector<8x1xf32> to vector<8x512xf32>
    %144 = arith.mulf %141, %143 : vector<8x512xf32>
    %145 = arith.addf %140, %144 : vector<8x512xf32>
    %c509_i32 = arith.constant 509 : i32
    %146 = tpu.dynamic_rotate %12 by %c509_i32 dim 1 : vector<8x512xf32>, i32 -> vector<8x512xf32>
    %147 = vector.extract_strided_slice %1 {offsets = [0, 27], sizes = [8, 1], strides = [1, 1]} : vector<8x49xf32> to vector<8x1xf32>
    %148 = vector.broadcast %147 : vector<8x1xf32> to vector<8x512xf32>
    %149 = arith.mulf %146, %148 : vector<8x512xf32>
    %150 = arith.addf %145, %149 : vector<8x512xf32>
    %c493_i32 = arith.constant 493 : i32
    %151 = tpu.dynamic_rotate %12 by %c493_i32 dim 1 : vector<8x512xf32>, i32 -> vector<8x512xf32>
    %152 = vector.extract_strided_slice %1 {offsets = [0, 28], sizes = [8, 1], strides = [1, 1]} : vector<8x49xf32> to vector<8x1xf32>
    %153 = vector.broadcast %152 : vector<8x1xf32> to vector<8x512xf32>
    %154 = arith.mulf %151, %153 : vector<8x512xf32>
    %155 = arith.addf %150, %154 : vector<8x512xf32>
    %c492_i32 = arith.constant 492 : i32
    %156 = tpu.dynamic_rotate %12 by %c492_i32 dim 1 : vector<8x512xf32>, i32 -> vector<8x512xf32>
    %157 = vector.extract_strided_slice %1 {offsets = [0, 29], sizes = [8, 1], strides = [1, 1]} : vector<8x49xf32> to vector<8x1xf32>
    %158 = vector.broadcast %157 : vector<8x1xf32> to vector<8x512xf32>
    %159 = arith.mulf %156, %158 : vector<8x512xf32>
    %160 = arith.addf %155, %159 : vector<8x512xf32>
    %c491_i32 = arith.constant 491 : i32
    %161 = tpu.dynamic_rotate %12 by %c491_i32 dim 1 : vector<8x512xf32>, i32 -> vector<8x512xf32>
    %162 = vector.extract_strided_slice %1 {offsets = [0, 30], sizes = [8, 1], strides = [1, 1]} : vector<8x49xf32> to vector<8x1xf32>
    %163 = vector.broadcast %162 : vector<8x1xf32> to vector<8x512xf32>
    %164 = arith.mulf %161, %163 : vector<8x512xf32>
    %165 = arith.addf %160, %164 : vector<8x512xf32>
    %c490_i32 = arith.constant 490 : i32
    %166 = tpu.dynamic_rotate %12 by %c490_i32 dim 1 : vector<8x512xf32>, i32 -> vector<8x512xf32>
    %167 = vector.extract_strided_slice %1 {offsets = [0, 31], sizes = [8, 1], strides = [1, 1]} : vector<8x49xf32> to vector<8x1xf32>
    %168 = vector.broadcast %167 : vector<8x1xf32> to vector<8x512xf32>
    %169 = arith.mulf %166, %168 : vector<8x512xf32>
    %170 = arith.addf %165, %169 : vector<8x512xf32>
    %c489_i32 = arith.constant 489 : i32
    %171 = tpu.dynamic_rotate %12 by %c489_i32 dim 1 : vector<8x512xf32>, i32 -> vector<8x512xf32>
    %172 = vector.extract_strided_slice %1 {offsets = [0, 32], sizes = [8, 1], strides = [1, 1]} : vector<8x49xf32> to vector<8x1xf32>
    %173 = vector.broadcast %172 : vector<8x1xf32> to vector<8x512xf32>
    %174 = arith.mulf %171, %173 : vector<8x512xf32>
    %175 = arith.addf %170, %174 : vector<8x512xf32>
    %c488_i32 = arith.constant 488 : i32
    %176 = tpu.dynamic_rotate %12 by %c488_i32 dim 1 : vector<8x512xf32>, i32 -> vector<8x512xf32>
    %177 = vector.extract_strided_slice %1 {offsets = [0, 33], sizes = [8, 1], strides = [1, 1]} : vector<8x49xf32> to vector<8x1xf32>
    %178 = vector.broadcast %177 : vector<8x1xf32> to vector<8x512xf32>
    %179 = arith.mulf %176, %178 : vector<8x512xf32>
    %180 = arith.addf %175, %179 : vector<8x512xf32>
    %c487_i32 = arith.constant 487 : i32
    %181 = tpu.dynamic_rotate %12 by %c487_i32 dim 1 : vector<8x512xf32>, i32 -> vector<8x512xf32>
    %182 = vector.extract_strided_slice %1 {offsets = [0, 34], sizes = [8, 1], strides = [1, 1]} : vector<8x49xf32> to vector<8x1xf32>
    %183 = vector.broadcast %182 : vector<8x1xf32> to vector<8x512xf32>
    %184 = arith.mulf %181, %183 : vector<8x512xf32>
    %185 = arith.addf %180, %184 : vector<8x512xf32>
    %c471_i32 = arith.constant 471 : i32
    %186 = tpu.dynamic_rotate %12 by %c471_i32 dim 1 : vector<8x512xf32>, i32 -> vector<8x512xf32>
    %187 = vector.extract_strided_slice %1 {offsets = [0, 35], sizes = [8, 1], strides = [1, 1]} : vector<8x49xf32> to vector<8x1xf32>
    %188 = vector.broadcast %187 : vector<8x1xf32> to vector<8x512xf32>
    %189 = arith.mulf %186, %188 : vector<8x512xf32>
    %190 = arith.addf %185, %189 : vector<8x512xf32>
    %c470_i32 = arith.constant 470 : i32
    %191 = tpu.dynamic_rotate %12 by %c470_i32 dim 1 : vector<8x512xf32>, i32 -> vector<8x512xf32>
    %192 = vector.extract_strided_slice %1 {offsets = [0, 36], sizes = [8, 1], strides = [1, 1]} : vector<8x49xf32> to vector<8x1xf32>
    %193 = vector.broadcast %192 : vector<8x1xf32> to vector<8x512xf32>
    %194 = arith.mulf %191, %193 : vector<8x512xf32>
    %195 = arith.addf %190, %194 : vector<8x512xf32>
    %c469_i32 = arith.constant 469 : i32
    %196 = tpu.dynamic_rotate %12 by %c469_i32 dim 1 : vector<8x512xf32>, i32 -> vector<8x512xf32>
    %197 = vector.extract_strided_slice %1 {offsets = [0, 37], sizes = [8, 1], strides = [1, 1]} : vector<8x49xf32> to vector<8x1xf32>
    %198 = vector.broadcast %197 : vector<8x1xf32> to vector<8x512xf32>
    %199 = arith.mulf %196, %198 : vector<8x512xf32>
    %200 = arith.addf %195, %199 : vector<8x512xf32>
    %c468_i32 = arith.constant 468 : i32
    %201 = tpu.dynamic_rotate %12 by %c468_i32 dim 1 : vector<8x512xf32>, i32 -> vector<8x512xf32>
    %202 = vector.extract_strided_slice %1 {offsets = [0, 38], sizes = [8, 1], strides = [1, 1]} : vector<8x49xf32> to vector<8x1xf32>
    %203 = vector.broadcast %202 : vector<8x1xf32> to vector<8x512xf32>
    %204 = arith.mulf %201, %203 : vector<8x512xf32>
    %205 = arith.addf %200, %204 : vector<8x512xf32>
    %c467_i32 = arith.constant 467 : i32
    %206 = tpu.dynamic_rotate %12 by %c467_i32 dim 1 : vector<8x512xf32>, i32 -> vector<8x512xf32>
    %207 = vector.extract_strided_slice %1 {offsets = [0, 39], sizes = [8, 1], strides = [1, 1]} : vector<8x49xf32> to vector<8x1xf32>
    %208 = vector.broadcast %207 : vector<8x1xf32> to vector<8x512xf32>
    %209 = arith.mulf %206, %208 : vector<8x512xf32>
    %210 = arith.addf %205, %209 : vector<8x512xf32>
    %c466_i32 = arith.constant 466 : i32
    %211 = tpu.dynamic_rotate %12 by %c466_i32 dim 1 : vector<8x512xf32>, i32 -> vector<8x512xf32>
    %212 = vector.extract_strided_slice %1 {offsets = [0, 40], sizes = [8, 1], strides = [1, 1]} : vector<8x49xf32> to vector<8x1xf32>
    %213 = vector.broadcast %212 : vector<8x1xf32> to vector<8x512xf32>
    %214 = arith.mulf %211, %213 : vector<8x512xf32>
    %215 = arith.addf %210, %214 : vector<8x512xf32>
    %c465_i32 = arith.constant 465 : i32
    %216 = tpu.dynamic_rotate %12 by %c465_i32 dim 1 : vector<8x512xf32>, i32 -> vector<8x512xf32>
    %217 = vector.extract_strided_slice %1 {offsets = [0, 41], sizes = [8, 1], strides = [1, 1]} : vector<8x49xf32> to vector<8x1xf32>
    %218 = vector.broadcast %217 : vector<8x1xf32> to vector<8x512xf32>
    %219 = arith.mulf %216, %218 : vector<8x512xf32>
    %220 = arith.addf %215, %219 : vector<8x512xf32>
    %c449_i32 = arith.constant 449 : i32
    %221 = tpu.dynamic_rotate %12 by %c449_i32 dim 1 : vector<8x512xf32>, i32 -> vector<8x512xf32>
    %222 = vector.extract_strided_slice %1 {offsets = [0, 42], sizes = [8, 1], strides = [1, 1]} : vector<8x49xf32> to vector<8x1xf32>
    %223 = vector.broadcast %222 : vector<8x1xf32> to vector<8x512xf32>
    %224 = arith.mulf %221, %223 : vector<8x512xf32>
    %225 = arith.addf %220, %224 : vector<8x512xf32>
    %c448_i32 = arith.constant 448 : i32
    %226 = tpu.dynamic_rotate %12 by %c448_i32 dim 1 : vector<8x512xf32>, i32 -> vector<8x512xf32>
    %227 = vector.extract_strided_slice %1 {offsets = [0, 43], sizes = [8, 1], strides = [1, 1]} : vector<8x49xf32> to vector<8x1xf32>
    %228 = vector.broadcast %227 : vector<8x1xf32> to vector<8x512xf32>
    %229 = arith.mulf %226, %228 : vector<8x512xf32>
    %230 = arith.addf %225, %229 : vector<8x512xf32>
    %c447_i32 = arith.constant 447 : i32
    %231 = tpu.dynamic_rotate %12 by %c447_i32 dim 1 : vector<8x512xf32>, i32 -> vector<8x512xf32>
    %232 = vector.extract_strided_slice %1 {offsets = [0, 44], sizes = [8, 1], strides = [1, 1]} : vector<8x49xf32> to vector<8x1xf32>
    %233 = vector.broadcast %232 : vector<8x1xf32> to vector<8x512xf32>
    %234 = arith.mulf %231, %233 : vector<8x512xf32>
    %235 = arith.addf %230, %234 : vector<8x512xf32>
    %c446_i32 = arith.constant 446 : i32
    %236 = tpu.dynamic_rotate %12 by %c446_i32 dim 1 : vector<8x512xf32>, i32 -> vector<8x512xf32>
    %237 = vector.extract_strided_slice %1 {offsets = [0, 45], sizes = [8, 1], strides = [1, 1]} : vector<8x49xf32> to vector<8x1xf32>
    %238 = vector.broadcast %237 : vector<8x1xf32> to vector<8x512xf32>
    %239 = arith.mulf %236, %238 : vector<8x512xf32>
    %240 = arith.addf %235, %239 : vector<8x512xf32>
    %c445_i32 = arith.constant 445 : i32
    %241 = tpu.dynamic_rotate %12 by %c445_i32 dim 1 : vector<8x512xf32>, i32 -> vector<8x512xf32>
    %242 = vector.extract_strided_slice %1 {offsets = [0, 46], sizes = [8, 1], strides = [1, 1]} : vector<8x49xf32> to vector<8x1xf32>
    %243 = vector.broadcast %242 : vector<8x1xf32> to vector<8x512xf32>
    %244 = arith.mulf %241, %243 : vector<8x512xf32>
    %245 = arith.addf %240, %244 : vector<8x512xf32>
    %c444_i32 = arith.constant 444 : i32
    %246 = tpu.dynamic_rotate %12 by %c444_i32 dim 1 : vector<8x512xf32>, i32 -> vector<8x512xf32>
    %247 = vector.extract_strided_slice %1 {offsets = [0, 47], sizes = [8, 1], strides = [1, 1]} : vector<8x49xf32> to vector<8x1xf32>
    %248 = vector.broadcast %247 : vector<8x1xf32> to vector<8x512xf32>
    %249 = arith.mulf %246, %248 : vector<8x512xf32>
    %250 = arith.addf %245, %249 : vector<8x512xf32>
    %c443_i32 = arith.constant 443 : i32
    %251 = tpu.dynamic_rotate %12 by %c443_i32 dim 1 : vector<8x512xf32>, i32 -> vector<8x512xf32>
    %252 = vector.extract_strided_slice %1 {offsets = [0, 48], sizes = [8, 1], strides = [1, 1]} : vector<8x49xf32> to vector<8x1xf32>
    %253 = vector.broadcast %252 : vector<8x1xf32> to vector<8x512xf32>
    %254 = arith.mulf %251, %253 : vector<8x512xf32>
    %255 = arith.addf %250, %254 : vector<8x512xf32>
    %c0_9 = arith.constant 0 : index
    %c0_10 = arith.constant 0 : index
    %256 = vector.load %arg6[%c0_9, %c0_10] : memref<8x1xf32, #tpu.memory_space<vmem>>, vector<8x1xf32>
    %257 = vector.broadcast %256 : vector<8x1xf32> to vector<8x512xf32>
    %258 = arith.addf %255, %257 : vector<8x512xf32>
    %259 = arith.negf %258 : vector<8x512xf32>
    %260 = math.exp %259 : vector<8x512xf32>
    %cst_11 = arith.constant 1.000000e+00 : f32
    %261 = vector.broadcast %cst_11 : f32 to vector<8x512xf32>
    %262 = arith.addf %261, %260 : vector<8x512xf32>
    %263 = arith.divf %261, %262 : vector<8x512xf32>
    %264 = arith.mulf %0, %263 : vector<8x512xf32>
    %c0_12 = arith.constant 0 : index
    %c0_13 = arith.constant 0 : index
    %265 = vector.load %arg7[%c0_12, %c0_13] : memref<8x512xf32, #tpu.memory_space<vmem>>, vector<8x512xf32>
    tpu.vector_store %arg7[%c0_12, %c0_13], %264 {strides = array<i32>} : memref<8x512xf32, #tpu.memory_space<vmem>>, vector<8x512xf32>,
    return
  }
  func.func @transform_0(%arg0: i32) -> (i32, i32) {
    %c0_i32 = arith.constant 0 : i32
    %c0_i32_0 = arith.constant 0 : i32
    return %arg0, %c0_i32 : i32, i32
  }
  func.func @transform_1(%arg0: i32) -> (i32, i32) {
    %c0_i32 = arith.constant 0 : i32
    %c0_i32_0 = arith.constant 0 : i32
    %c0_i32_1 = arith.constant 0 : i32
    return %c0_i32, %c0_i32_0 : i32, i32
  }
  func.func @transform_2(%arg0: i32) -> (i32, i32) {
    %c0_i32 = arith.constant 0 : i32
    %c0_i32_0 = arith.constant 0 : i32
    return %arg0, %c0_i32 : i32, i32
  }
  func.func @transform_3(%arg0: i32) -> (i32, i32) {
    %c0_i32 = arith.constant 0 : i32
    %c0_i32_0 = arith.constant 0 : i32
    return %arg0, %c0_i32 : i32, i32
  }
  func.func @transform_4(%arg0: i32) -> (i32, i32) {
    %c0_i32 = arith.constant 0 : i32
    %c0_i32_0 = arith.constant 0 : i32
    return %arg0, %c0_i32 : i32, i32
  }
  func.func @transform_5(%arg0: i32) -> (i32, i32) {
    %c0_i32 = arith.constant 0 : i32
    %c0_i32_0 = arith.constant 0 : i32
    return %arg0, %c0_i32 : i32, i32
  }
  func.func @transform_6(%arg0: i32) -> (i32, i32) {
    %c0_i32 = arith.constant 0 : i32
    %c0_i32_0 = arith.constant 0 : i32
    return %arg0, %c0_i32 : i32, i32
  }
}

</mosaic_0001>

<bundles_post_ra>
// kernel: tile.36
= control target key start
LH: loop header
LB: loop body
LE: loop exit
PB: predicated region body
PF: predicated region fallthrough
CT: control target
= control target key end

     0   :  { %s22_s0 = inlined_call_operand.vmem [shape: f32[4], index: 0, kind: input, shape index: {}]   ;;  %s23_s1 = inlined_call_operand.vmem [shape: f32[2,4], index: 1, kind: output, shape index: {}]  }
   0x1   :  { %v4_v0 = vld [vmem:[%s22_s0] ss:$0 sm:$0xff] }
   0x2   :  { %5 = vst [vmem:[%s23_s1] sm:$0x3] %v4_v0 }

// kernel: tile.0
= control target key start
LH: loop header
LB: loop body
LE: loop exit
PB: predicated region body
PF: predicated region fallthrough
CT: control target
= control target key end

     0   :  { %s35_s8 = smov 125   ;;  %vm8_vm0 = vcmask 7168   ;;  %s36_s11 = smov 126   ;;  %s62_s0 = inlined_call_operand.vmem [shape: f32[2,4], index: 0, kind: input, shape index: {}]   ;;  %s63_s1 = inlined_call_operand.vmem [shape: f32[8,1], index: 1, kind: output, shape index: {}]  }
   0x1   :  { %v5_v0 = vld [vmem:[%s62_s0] sm:$0x3]  ;;  %s34_s0 = smov 127  }
   0x2   :  { %6 = vst [vmem:[#allocation0] sm:$0x3] %v5_v0 }
   0x9   :  { %v10_v1 = vld [vmem:[#allocation0] sm:$0x3]  }
   0xa   :  { %v22_v2 = vld [vmem:[#allocation0] sm:$0x3]   ;;  %11 = vrot.lane.b32.xlu0 %v10_v1, %s34_s0 }
   0xb   :  { %23 = vrot.lane.b32.xlu1 %v22_v2, %s35_s8  ;;  %v7_v3 = vld [vmem:[#allocation0] sm:$0x3]  }
   0xc   :  { %v16_v4 = vld [vmem:[#allocation0] sm:$0x3]   ;;  %9 = vst.msk [vmem:[%s63_s1] ss:$4 sm:$0x3] %vm8_vm0, %v7_v3  }
   0xe   :  { %17 = vrot.lane.b32.xlu0 %v16_v4, %s36_s11 }
  0x7c   :  { %v12_v5 = vpop.permute.xlu0 %11  }
  0x7d   :  { %v24_v6 = vpop.permute.xlu1 %23   ;;  %28 = vst.msk [vmem:[%s63_s1 + $0x1] ss:$4 sm:$0x3] %vm8_vm0, %v12_v5  }
  0x7e   :  { %30 = vst.msk [vmem:[%s63_s1 + $0x3] ss:$4 sm:$0x3] %vm8_vm0, %v24_v6  }
  0x80   :  { %v18_v7 = vpop.permute.xlu0 %17  }
  0x81   :  { %29 = vst.msk [vmem:[%s63_s1 + $0x2] ss:$4 sm:$0x3] %vm8_vm0, %v18_v7  }

// kernel: xunit_forward.1
= control target key start
LH: loop header
LB: loop body
LE: loop exit
PB: predicated region body
PF: predicated region fallthrough
CT: control target
= control target key end

     0   :  { %v3150_v0 = vmov 0   ;;  %v1466_v4 = vmov 1   ;;  %v1467_v5 = vmov 2   ;;  %v1468_v6 = vmov 3   ;;  %s1478_s11 = smov 68   ;;  %s1479_s12 = smov 67   ;;  %s3142_s3 = inlined_call_operand.vmem [shape: f32[8,1], index: 3, kind: input, shape index: {}]   ;;  %s3143_s4 = inlined_call_operand.vmem [shape: f32[8,1], index: 4, kind: input, shape index: {}]   ;;  %s3144_s2 = inlined_call_operand.vmem [shape: f32[8,49], index: 2, kind: input, shape index: {}]   ;;  %s3145_s0 = inlined_call_operand.vmem [shape: f32[8,512], index: 0, kind: input, shape index: {}]   ;;  %s3146_s1 = inlined_call_operand.vmem [shape: f32[1,512], index: 1, kind: input, shape index: {}]   ;;  %s3147_s5 = inlined_call_operand.vmem [shape: f32[8,1], index: 5, kind: input, shape index: {}]   ;;  %s3148_s6 = inlined_call_operand.vmem [shape: f32[8,512], index: 6, kind: output, shape index: {}]  }
   0x1   :  { %1394 = vset.pattern.permute.xlu0 %v3150_v0  ;;  %v28_v1 = vld [vmem:[%s3142_s3] sm:$0xff]  ;;  %1395 = vset.pattern.permute.xlu1 %v1466_v4  ;;  %v1469_v7 = vmov 4   ;;  %v1470_v8 = vmov 5   ;;  %v1471_v9 = vmov 6   ;;  %v1472_v10 = vmov 7   ;;  %v24_v19 = vld [vmem:[%s3145_s0 + $0x8] sm:$0xff] }
   0x2   :  { %31 = vperm.xlu0 %1394, %v28_v1   ;;  %v38_v2 = vld [vmem:[%s3143_s4] sm:$0xff]  ;;  %v1473_v11 = vmov 8   ;;  %v1474_v12 = vmov 9   ;;  %v1475_v13 = vmov 10   ;;  %v1476_v14 = vmov 11   ;;  %v25_v20 = vld [vmem:[%s3145_s0 + $0x10] sm:$0xff] }
   0x3   :  { %v1604_v3 = vld [vmem:[%s3144_s2] sm:$0xff]  ;;  %v3149_v15 = vlaneseq  ;;  %v26_v27 = vld [vmem:[%s3145_s0 + $0x18] sm:$0xff]  ;;  %s1480_s13 = smov 66   ;;  %s1481_s14 = smov 65   ;;  %v1490_v48 = vmov 12   ;;  %v1492_v49 = vmov 13  }
   0x4   :  { %116 = vperm.xlu1 %1395, %v1604_v3   ;;  %v23_v18 = vld [vmem:[%s3145_s0] sm:$0xff]  ;;  %s1482_s15 = smov 64   ;;  %s1483_s16 = smov 63   ;;  %v1494_v51 = vmov 14   ;;  %v1496_v54 = vmov 15   ;;  %v1498_v56 = vmov 16  }
   0x5   :  { %v55_v16 = vshrl.u32 %v3149_v15, 7  ;;  %v52_v23 = vld [vmem:[%s3146_s1] sm:$0xf]  ;;  %s1477_s1 = smov 69   ;;  %s1484_s17 = smov 47   ;;  %v1500_v58 = vmov 17  }
   0x6   :  { %41 = vperm.xlu0 %1394, %v38_v2   ;;  %s1485_s18 = smov 46   ;;  %s1486_s19 = smov 45   ;;  %v1502_v62 = vmov 18   ;;  %v1504_v2 = vmov 19  }
   0x7   :  { %v56_v21 = vsub.s32 0, %v55_v16  ;;  %v64_v22 = vsub.s32 2, %v55_v16  ;;  %v60_v28 = vsub.s32 1, %v55_v16  ;;  %v68_v38 = vsub.s32 3, %v55_v16  ;;  %s1487_s20 = smov 44   ;;  %s1488_s21 = smov 43  }
   0x8   :  { %s1489_s22 = smov 42   ;;  %s1491_s23 = smov 41  }
   0x9   :  { %v57_v30 = vrot.slane %v52_v23, %v56_v21  ;;  %v65_v34 = vrot.slane %v52_v23, %v64_v22  ;;  %v61_v39 = vrot.slane %v52_v23, %v60_v28  ;;  %v69_v45 = vrot.slane %v52_v23, %v68_v38  ;;  %s1493_s24 = smov 25   ;;  %s1495_s25 = smov 24  }
   0xa   :  { %95 = vperm.xlu0 %1394, %v1604_v3   ;;  %s1497_s26 = smov 23   ;;  %s1499_s3 = smov 22   ;;  %v1512_v21 = vmov 23  }
   0xb   :  { %s1501_s4 = smov 21   ;;  %s1503_s27 = smov 20  }
   0xc   :  { %s1505_s28 = smov 19   ;;  %s1507_s29 = smov 3  }
   0xd   :  { %s1509_s30 = smov 2   ;;  %s1511_s7 = smov 1  }
   0xe   :  { %1396 = vset.pattern.permute.xlu0 %v1467_v5  ;;  %s1514_s8 = smov 127   ;;  %s1516_s9 = smov 126  }
   0xf   :  { %141 = vperm.xlu0 %1396, %v1604_v3   ;;  %s1517_s10 = smov 125  }
  0x13   :  { %1397 = vset.pattern.permute.xlu0 %v1468_v6 }
  0x14   :  { %166 = vperm.xlu0 %1397, %v1604_v3  }
  0x18   :  { %1398 = vset.pattern.permute.xlu0 %v1469_v7  ;;  %v1506_v7 = vmov 20  }
  0x19   :  { %191 = vperm.xlu0 %1398, %v1604_v3  }
  0x1d   :  { %1399 = vset.pattern.permute.xlu0 %v1470_v8 }
  0x1e   :  { %216 = vperm.xlu0 %1399, %v1604_v3  }
  0x22   :  { %1400 = vset.pattern.permute.xlu0 %v1471_v9 }
  0x23   :  { %241 = vperm.xlu0 %1400, %v1604_v3  }
  0x27   :  { %1401 = vset.pattern.permute.xlu0 %v1472_v10 }
  0x28   :  { %266 = vperm.xlu0 %1401, %v1604_v3  }
  0x2c   :  { %1402 = vset.pattern.permute.xlu0 %v1473_v11 }
  0x2d   :  { %291 = vperm.xlu0 %1402, %v1604_v3  }
  0x31   :  { %1403 = vset.pattern.permute.xlu0 %v1474_v12  ;;  %v1508_v12 = vmov 21  }
  0x32   :  { %316 = vperm.xlu0 %1403, %v1604_v3  }
  0x36   :  { %1404 = vset.pattern.permute.xlu0 %v1475_v13 }
  0x37   :  { %341 = vperm.xlu0 %1404, %v1604_v3  }
  0x3b   :  { %1405 = vset.pattern.permute.xlu0 %v1476_v14 }
  0x7d   :  { %v32_v17 = vpop.permute.xlu0 %31 }
  0x7e   :  { %v34_v24 = vmul.f32 %v32_v17, %v23_v18  ;;  %v35_v25 = vmul.f32 %v32_v17, %v24_v19  ;;  %v36_v26 = vmul.f32 %v32_v17, %v25_v20  ;;  %v37_v35 = vmul.f32 %v32_v17, %v26_v27 }
  0x7f   :  { %v1734_v60 = vpop.permute.xlu1 %116  ;;  %v1510_v17 = vmov 22   ;;  %v1515_v27 = vmov 26  }
  0x81   :  { %v42_v29 = vpop.permute.xlu0 %41 }
  0x82   :  { %v44_v31 = vadd.f32 %v42_v29, %v34_v24  ;;  %v45_v32 = vadd.f32 %v42_v29, %v35_v25  ;;  %v46_v33 = vadd.f32 %v42_v29, %v36_v26  ;;  %v47_v40 = vadd.f32 %v42_v29, %v37_v35 }
  0x83   :  { %v1513_v24 = vmov 24  }
  0x84   :  { %v48_v36 = vmax.f32 %v44_v31, 0.0  ;;  %v50_v37 = vmax.f32 %v46_v33, 0.0  ;;  %v49_v41 = vmax.f32 %v45_v32, 0.0  ;;  %v51_v44 = vmax.f32 %v47_v40, 0.0  ;;  %1418 = vset.pattern.permute.xlu1 %v1513_v24 }
  0x85   :  { %v1690_v50 = vpop.permute.xlu0 %95  ;;  %v1520_v40 = vmov 28  }
  0x86   :  { %v1633_v42 = vmul.f32 %v57_v30, %v48_v36  ;;  %v1635_v43 = vmul.f32 %v65_v34, %v50_v37  ;;  %v1639_v46 = vmul.f32 %v61_v39, %v49_v41  ;;  %v1643_v47 = vmul.f32 %v69_v45, %v51_v44 }
  0x87   :  { %v1518_v36 = vmov 27  }
  0x88   :  { %3229 = vst [vmem:[#allocation2_spill] sm:$0xff] %v1635_v43  ;;  %82 = vrot.lane.b32.xlu0 %v1635_v43, %s1477_s1  ;;  %78 = vrot.lane.b32.xlu1 %v1633_v42, %s1477_s1 }
  0x8a   :  { %v1696_v52 = vpop.permute.xlu0 %141 }
  0x8c   :  { %104 = vrot.lane.b32.xlu0 %v1639_v46, %s1478_s11  ;;  %80 = vrot.lane.b32.xlu1 %v1639_v46, %s1477_s1 }
  0x8f   :  { %v1705_v53 = vpop.permute.xlu0 %166 }
  0x90   :  { %108 = vrot.lane.b32.xlu0 %v1643_v47, %s1478_s11  ;;  %84 = vrot.lane.b32.xlu1 %v1643_v47, %s1477_s1  ;;  %s1519_s1 = smov 109  }
  0x94   :  { %127 = vrot.lane.b32.xlu0 %v1633_v42, %s1479_s12  ;;  %102 = vrot.lane.b32.xlu1 %v1633_v42, %s1478_s11  ;;  %v1710_v55 = vpop.permute.xlu0 %191 }
  0x98   :  { %131 = vrot.lane.b32.xlu0 %v1635_v43, %s1479_s12  ;;  %106 = vrot.lane.b32.xlu1 %v1635_v43, %s1478_s11  ;;  %s1521_s11 = smov 108  }
  0x99   :  { %v1719_v57 = vpop.permute.xlu0 %216 }
  0x9c   :  { %156 = vrot.lane.b32.xlu0 %v1635_v43, %s1480_s13  ;;  %129 = vrot.lane.b32.xlu1 %v1639_v46, %s1479_s12 }
  0x9e   :  { %v1725_v59 = vpop.permute.xlu0 %241 }
  0xa0   :  { %181 = vrot.lane.b32.xlu0 %v1635_v43, %s1481_s14  ;;  %133 = vrot.lane.b32.xlu1 %v1643_v47, %s1479_s12  ;;  %s1523_s12 = smov 107  }
  0xa3   :  { %v1736_v61 = vpop.permute.xlu0 %266 }
  0xa4   :  { %206 = vrot.lane.b32.xlu0 %v1635_v43, %s1482_s15  ;;  %152 = vrot.lane.b32.xlu1 %v1633_v42, %s1480_s13 }
  0xa8   :  { %231 = vrot.lane.b32.xlu0 %v1635_v43, %s1483_s16  ;;  %154 = vrot.lane.b32.xlu1 %v1639_v46, %s1480_s13  ;;  %v1743_v1 = vpop.permute.xlu0 %291 }
  0xac   :  { %256 = vrot.lane.b32.xlu0 %v1635_v43, %s1484_s17  ;;  %158 = vrot.lane.b32.xlu1 %v1643_v47, %s1480_s13  ;;  %s1525_s13 = smov 106  }
  0xad   :  { %v1754_v5 = vpop.permute.xlu0 %316 }
  0xb0   :  { %281 = vrot.lane.b32.xlu0 %v1635_v43, %s1485_s18  ;;  %177 = vrot.lane.b32.xlu1 %v1633_v42, %s1481_s14 }
  0xb2   :  { %v1764_v9 = vpop.permute.xlu0 %341 }
  0xb3   :  { %3230 = vst [vmem:[#allocation3_spill] sm:$0xff] %v1764_v9 }
  0xb4   :  { %306 = vrot.lane.b32.xlu0 %v1635_v43, %s1486_s19  ;;  %179 = vrot.lane.b32.xlu1 %v1639_v46, %s1481_s14 }
  0xb8   :  { %331 = vrot.lane.b32.xlu0 %v1635_v43, %s1487_s20  ;;  %183 = vrot.lane.b32.xlu1 %v1643_v47, %s1481_s14  ;;  %s1527_s14 = smov 105  }
  0xbc   :  { %356 = vrot.lane.b32.xlu0 %v1635_v43, %s1488_s21  ;;  %202 = vrot.lane.b32.xlu1 %v1633_v42, %s1482_s15 }
  0xc0   :  { %366 = vperm.xlu0 %1405, %v1604_v3   ;;  %204 = vrot.lane.b32.xlu1 %v1639_v46, %s1482_s15 }
  0xc4   :  { %381 = vrot.lane.b32.xlu0 %v1635_v43, %s1489_s22  ;;  %208 = vrot.lane.b32.xlu1 %v1643_v47, %s1482_s15  ;;  %s1529_s15 = smov 104  }
  0xc5   :  { %1406 = vset.pattern.permute.xlu0 %v1490_v48 }
  0xc8   :  { %391 = vperm.xlu0 %1406, %v1604_v3   ;;  %227 = vrot.lane.b32.xlu1 %v1633_v42, %s1483_s16 }
  0xcc   :  { %406 = vrot.lane.b32.xlu0 %v1635_v43, %s1491_s23  ;;  %229 = vrot.lane.b32.xlu1 %v1639_v46, %s1483_s16 }
  0xcd   :  { %1407 = vset.pattern.permute.xlu0 %v1492_v49  ;;  %v1522_v49 = vmov 29  }
  0xd0   :  { %416 = vperm.xlu0 %1407, %v1604_v3   ;;  %233 = vrot.lane.b32.xlu1 %v1643_v47, %s1483_s16  ;;  %s1531_s16 = smov 103  }
  0xd4   :  { %431 = vrot.lane.b32.xlu0 %v1635_v43, %s1493_s24  ;;  %252 = vrot.lane.b32.xlu1 %v1633_v42, %s1484_s17 }
  0xd5   :  { %1408 = vset.pattern.permute.xlu0 %v1494_v51 }
  0xd8   :  { %441 = vperm.xlu0 %1408, %v1604_v3   ;;  %254 = vrot.lane.b32.xlu1 %v1639_v46, %s1484_s17 }
  0xdc   :  { %456 = vrot.lane.b32.xlu0 %v1635_v43, %s1495_s25  ;;  %258 = vrot.lane.b32.xlu1 %v1643_v47, %s1484_s17  ;;  %s1533_s17 = smov 87  }
  0xdd   :  { %1409 = vset.pattern.permute.xlu0 %v1496_v54 }
  0xe0   :  { %466 = vperm.xlu0 %1409, %v1604_v3   ;;  %277 = vrot.lane.b32.xlu1 %v1633_v42, %s1485_s18 }
  0xe4   :  { %481 = vrot.lane.b32.xlu0 %v1635_v43, %s1497_s26  ;;  %279 = vrot.lane.b32.xlu1 %v1639_v46, %s1485_s18 }
  0xe5   :  { %1410 = vset.pattern.permute.xlu0 %v1498_v56 }
  0xe8   :  { %491 = vperm.xlu0 %1410, %v1604_v3   ;;  %283 = vrot.lane.b32.xlu1 %v1643_v47, %s1485_s18  ;;  %s1535_s18 = smov 86  }
  0xec   :  { %506 = vrot.lane.b32.xlu0 %v1635_v43, %s1499_s3  ;;  %302 = vrot.lane.b32.xlu1 %v1633_v42, %s1486_s19 }
  0xed   :  { %1411 = vset.pattern.permute.xlu0 %v1500_v58  ;;  %v1524_v58 = vmov 30  }
  0xf0   :  { %516 = vperm.xlu0 %1411, %v1604_v3   ;;  %304 = vrot.lane.b32.xlu1 %v1639_v46, %s1486_s19 }
  0xf4   :  { %531 = vrot.lane.b32.xlu0 %v1635_v43, %s1501_s4  ;;  %308 = vrot.lane.b32.xlu1 %v1643_v47, %s1486_s19  ;;  %s1537_s19 = smov 85  }
  0xf5   :  { %1412 = vset.pattern.permute.xlu0 %v1502_v62 }
  0xf8   :  { %541 = vperm.xlu0 %1412, %v1604_v3   ;;  %327 = vrot.lane.b32.xlu1 %v1633_v42, %s1487_s20 }
  0xfa   :  { %v1741_v63 = vpop.permute.xlu1 %78  ;;  %v1775_v11 = vpop.permute.xlu0 %82 }
  0xfc   :  { %556 = vrot.lane.b32.xlu0 %v1635_v43, %s1503_s27  ;;  %329 = vrot.lane.b32.xlu1 %v1639_v46, %s1487_s20 }
  0xfd   :  { %1413 = vset.pattern.permute.xlu0 %v1504_v2 }
  0xfe   :  { %v1749_v4 = vpop.permute.xlu1 %80  ;;  %v1784_v16 = vpop.permute.xlu0 %104 }
 0x100   :  { %566 = vperm.xlu0 %1413, %v1604_v3   ;;  %333 = vrot.lane.b32.xlu1 %v1643_v47, %s1487_s20  ;;  %s1539_s20 = smov 84  }
 0x102   :  { %v1756_v6 = vpop.permute.xlu1 %84  ;;  %v1795_v19 = vpop.permute.xlu0 %108 }
 0x104   :  { %581 = vrot.lane.b32.xlu0 %v1635_v43, %s1505_s28  ;;  %352 = vrot.lane.b32.xlu1 %v1633_v42, %s1488_s21 }
 0x105   :  { %1414 = vset.pattern.permute.xlu0 %v1506_v7 }
 0x106   :  { %v1762_v8 = vpop.permute.xlu1 %102  ;;  %v1805_v23 = vpop.permute.xlu0 %127 }
 0x108   :  { %591 = vperm.xlu0 %1414, %v1604_v3   ;;  %354 = vrot.lane.b32.xlu1 %v1639_v46, %s1488_s21 }
 0x10a   :  { %v1769_v10 = vpop.permute.xlu1 %106  ;;  %v1816_v26 = vpop.permute.xlu0 %131 }
 0x10c   :  { %606 = vrot.lane.b32.xlu0 %v1635_v43, %s1507_s29  ;;  %358 = vrot.lane.b32.xlu1 %v1643_v47, %s1488_s21  ;;  %s1541_s21 = smov 83  }
 0x10d   :  { %1415 = vset.pattern.permute.xlu0 %v1508_v12  ;;  %v1526_v12 = vmov 31  }
 0x10e   :  { %v1777_v13 = vpop.permute.xlu1 %129  ;;  %v1826_v30 = vpop.permute.xlu0 %156 }
 0x110   :  { %616 = vperm.xlu0 %1415, %v1604_v3   ;;  %377 = vrot.lane.b32.xlu1 %v1633_v42, %s1489_s22 }
 0x112   :  { %v1782_v14 = vpop.permute.xlu1 %133  ;;  %v1838_v32 = vpop.permute.xlu0 %181 }
 0x114   :  { %631 = vrot.lane.b32.xlu0 %v1635_v43, %s1509_s30  ;;  %379 = vrot.lane.b32.xlu1 %v1639_v46, %s1489_s22 }
 0x115   :  { %1416 = vset.pattern.permute.xlu0 %v1510_v17 }
 0x116   :  { %v1790_v18 = vpop.permute.xlu1 %152  ;;  %v1847_v35 = vpop.permute.xlu0 %206 }
 0x118   :  { %641 = vperm.xlu0 %1416, %v1604_v3   ;;  %383 = vrot.lane.b32.xlu1 %v1643_v47, %s1489_s22  ;;  %s1543_s22 = smov 82  }
 0x11a   :  { %v1797_v20 = vpop.permute.xlu1 %154  ;;  %v1858_v38 = vpop.permute.xlu0 %231 }
 0x11c   :  { %656 = vrot.lane.b32.xlu0 %v1635_v43, %s1511_s7  ;;  %402 = vrot.lane.b32.xlu1 %v1633_v42, %s1491_s23 }
 0x11d   :  { %1417 = vset.pattern.permute.xlu0 %v1512_v21 }
 0x11e   :  { %v1803_v22 = vpop.permute.xlu1 %158  ;;  %v1868_v44 = vpop.permute.xlu0 %256 }
 0x120   :  { %666 = vperm.xlu0 %1417, %v1604_v3   ;;  %404 = vrot.lane.b32.xlu1 %v1639_v46, %s1491_s23 }
 0x122   :  { %v1810_v25 = vpop.permute.xlu1 %177  ;;  %v1879_v48 = vpop.permute.xlu0 %281 }
 0x124   :  { %691 = vrot.lane.b32.xlu0 %v1639_v46, %s1514_s8  ;;  %408 = vrot.lane.b32.xlu1 %v1643_v47, %s1491_s23  ;;  %s1546_s23 = smov 81  }
 0x125   :  { %1420 = vset.pattern.permute.xlu0 %v1515_v27 }
 0x126   :  { %v1818_v28 = vpop.permute.xlu1 %179  ;;  %v1888_v56 = vpop.permute.xlu0 %306 }
 0x128   :  { %695 = vrot.lane.b32.xlu0 %v1643_v47, %s1514_s8  ;;  %427 = vrot.lane.b32.xlu1 %v1633_v42, %s1493_s24 }
 0x12a   :  { %v1824_v29 = vpop.permute.xlu1 %183  ;;  %v1899_v2 = vpop.permute.xlu0 %331 }
 0x12b   :  { %3231 = vst [vmem:[#allocation4_spill] sm:$0xff] %v1899_v2 }
 0x12c   :  { %714 = vrot.lane.b32.xlu0 %v1633_v42, %s1516_s9  ;;  %429 = vrot.lane.b32.xlu1 %v1639_v46, %s1493_s24 }
 0x12e   :  { %v1832_v31 = vpop.permute.xlu1 %202  ;;  %v1909_v21 = vpop.permute.xlu0 %356 }
 0x12f   :  { %3232 = vst [vmem:[#allocation5_spill] sm:$0xff] %v1909_v21 }
 0x130   :  { %718 = vrot.lane.b32.xlu0 %v1635_v43, %s1516_s9  ;;  %433 = vrot.lane.b32.xlu1 %v1643_v47, %s1493_s24  ;;  %s1550_s24 = smov 62  }
 0x132   :  { %v1840_v33 = vpop.permute.xlu1 %204 }
 0x134   :  { %728 = vperm.xlu0 %1420, %v1604_v3   ;;  %452 = vrot.lane.b32.xlu1 %v1633_v42, %s1495_s25 }
 0x136   :  { %v1845_v34 = vpop.permute.xlu1 %208 }
 0x138   :  { %743 = vrot.lane.b32.xlu0 %v1635_v43, %s1517_s10  ;;  %454 = vrot.lane.b32.xlu1 %v1639_v46, %s1495_s25 }
 0x139   :  { %1421 = vset.pattern.permute.xlu0 %v1518_v36  ;;  %v1528_v36 = vmov 32  }
 0x13a   :  { %v1853_v37 = vpop.permute.xlu1 %227 }
 0x13b   :  { %v1916_v27 = vpop.permute.xlu0 %366 }
 0x13c   :  { %753 = vperm.xlu0 %1421, %v1604_v3   ;;  %458 = vrot.lane.b32.xlu1 %v1643_v47, %s1495_s25  ;;  %3233 = vst [vmem:[#allocation6_spill] sm:$0xff] %v1916_v27  ;;  %s1552_s25 = smov 61  }
 0x13e   :  { %v1860_v39 = vpop.permute.xlu1 %229 }
 0x140   :  { %768 = vrot.lane.b32.xlu0 %v1635_v43, %s1519_s1  ;;  %477 = vrot.lane.b32.xlu1 %v1633_v42, %s1497_s26 }
 0x141   :  { %1422 = vset.pattern.permute.xlu0 %v1520_v40 }
 0x142   :  { %v1866_v41 = vpop.permute.xlu1 %233 }
 0x144   :  { %778 = vperm.xlu0 %1422, %v1604_v3   ;;  %479 = vrot.lane.b32.xlu1 %v1639_v46, %s1497_s26 }
 0x146   :  { %v1873_v45 = vpop.permute.xlu1 %252 }
 0x148   :  { %793 = vrot.lane.b32.xlu0 %v1635_v43, %s1521_s11  ;;  %483 = vrot.lane.b32.xlu1 %v1643_v47, %s1497_s26  ;;  %s1554_s26 = smov 60  }
 0x149   :  { %1423 = vset.pattern.permute.xlu0 %v1522_v49  ;;  %v1927_v49 = vpop.permute.xlu0 %381 }
 0x14a   :  { %v1881_v51 = vpop.permute.xlu1 %254  ;;  %3234 = vst [vmem:[#allocation7_spill] sm:$0xff] %v1927_v49 }
 0x14c   :  { %803 = vperm.xlu0 %1423, %v1604_v3   ;;  %502 = vrot.lane.b32.xlu1 %v1633_v42, %s1499_s3 }
 0x14d   :  { %v1937_v15 = vpop.permute.xlu0 %391 }
 0x14e   :  { %v1886_v54 = vpop.permute.xlu1 %258  ;;  %3236 = vst [vmem:[#allocation9_spill] sm:$0xff] %v1937_v15 }
 0x150   :  { %818 = vrot.lane.b32.xlu0 %v1635_v43, %s1523_s12  ;;  %504 = vrot.lane.b32.xlu1 %v1639_v46, %s1499_s3 }
 0x151   :  { %1424 = vset.pattern.permute.xlu0 %v1524_v58  ;;  %v1948_v27 = vpop.permute.xlu0 %406 }
 0x152   :  { %v1894_v62 = vpop.permute.xlu1 %277  ;;  %3238 = vst [vmem:[#allocation11_spill] sm:$0xff] %v1948_v27  ;;  %v1534_v27 = vmov 35  }
 0x154   :  { %828 = vperm.xlu0 %1424, %v1604_v3   ;;  %508 = vrot.lane.b32.xlu1 %v1643_v47, %s1499_s3  ;;  %s1555_s3 = smov 59  }
 0x155   :  { %v1957_v9 = vpop.permute.xlu0 %416 }
 0x156   :  { %v1901_v7 = vpop.permute.xlu1 %279  ;;  %3241 = vst [vmem:[#allocation14_spill] sm:$0xff] %v1957_v9  ;;  %v1536_v9 = vmov 36  }
 0x158   :  { %843 = vrot.lane.b32.xlu0 %v1635_v43, %s1525_s13  ;;  %527 = vrot.lane.b32.xlu1 %v1633_v42, %s1501_s4 }
 0x159   :  { %1425 = vset.pattern.permute.xlu0 %v1526_v12  ;;  %v1530_v12 = vmov 33   ;;  %v1968_v21 = vpop.permute.xlu0 %431 }
 0x15a   :  { %v1907_v17 = vpop.permute.xlu1 %283  ;;  %3243 = vst [vmem:[#allocation16_spill] sm:$0xff] %v1968_v21 }
 0x15c   :  { %853 = vperm.xlu0 %1425, %v1604_v3   ;;  %529 = vrot.lane.b32.xlu1 %v1639_v46, %s1501_s4 }
 0x15e   :  { %v1914_v24 = vpop.permute.xlu1 %302 }
 0x160   :  { %868 = vrot.lane.b32.xlu0 %v1635_v43, %s1527_s14  ;;  %533 = vrot.lane.b32.xlu1 %v1643_v47, %s1501_s4 }
 0x161   :  { %1426 = vset.pattern.permute.xlu0 %v1528_v36 }
 0x162   :  { %v1922_v40 = vpop.permute.xlu1 %304 }
 0x164   :  { %878 = vperm.xlu0 %1426, %v1604_v3   ;;  %552 = vrot.lane.b32.xlu1 %v1633_v42, %s1503_s27 }
 0x166   :  { %v1929_v58 = vpop.permute.xlu1 %308 }
 0x168   :  { %893 = vrot.lane.b32.xlu0 %v1635_v43, %s1529_s15  ;;  %554 = vrot.lane.b32.xlu1 %v1639_v46, %s1503_s27 }
 0x169   :  { %1427 = vset.pattern.permute.xlu0 %v1530_v12  ;;  %v1532_v12 = vmov 34  }
 0x16a   :  { %v1935_v36 = vpop.permute.xlu1 %327 }
 0x16b   :  { %3235 = vst [vmem:[#allocation8_spill] sm:$0xff] %v1935_v36  ;;  %v1549_v36 = vmov 46  }
 0x16c   :  { %903 = vperm.xlu0 %1427, %v1604_v3   ;;  %558 = vrot.lane.b32.xlu1 %v1643_v47, %s1503_s27 }
 0x16e   :  { %v1942_v0 = vpop.permute.xlu1 %329 }
 0x16f   :  { %3237 = vst [vmem:[#allocation10_spill] sm:$0xff] %v1942_v0 }
 0x170   :  { %918 = vrot.lane.b32.xlu0 %v1635_v43, %s1531_s16  ;;  %577 = vrot.lane.b32.xlu1 %v1633_v42, %s1505_s28 }
 0x171   :  { %1428 = vset.pattern.permute.xlu0 %v1532_v12 }
 0x172   :  { %v1950_v49 = vpop.permute.xlu1 %333 }
 0x173   :  { %3239 = vst [vmem:[#allocation12_spill] sm:$0xff] %v1950_v49 }
 0x174   :  { %928 = vperm.xlu0 %1428, %v1604_v3   ;;  %579 = vrot.lane.b32.xlu1 %v1639_v46, %s1505_s28 }
 0x176   :  { %v1955_v15 = vpop.permute.xlu1 %352 }
 0x177   :  { %3240 = vst [vmem:[#allocation13_spill] sm:$0xff] %v1955_v15 }
 0x178   :  { %943 = vrot.lane.b32.xlu0 %v1635_v43, %s1533_s17  ;;  %583 = vrot.lane.b32.xlu1 %v1643_v47, %s1505_s28 }
 0x179   :  { %1429 = vset.pattern.permute.xlu0 %v1534_v27 }
 0x17a   :  { %v1963_v12 = vpop.permute.xlu1 %354 }
 0x17b   :  { %3242 = vst [vmem:[#allocation15_spill] sm:$0xff] %v1963_v12  ;;  %v1978_v12 = vpop.permute.xlu0 %441 }
 0x17c   :  { %953 = vperm.xlu0 %1429, %v1604_v3   ;;  %602 = vrot.lane.b32.xlu1 %v1633_v42, %s1507_s29  ;;  %3246 = vst [vmem:[#allocation19_spill] sm:$0xff] %v1978_v12 }
 0x17e   :  { %v1970_v15 = vpop.permute.xlu1 %358 }
 0x17f   :  { %3244 = vst [vmem:[#allocation17_spill] sm:$0xff] %v1970_v15  ;;  %v1989_v15 = vpop.permute.xlu0 %456 }
 0x180   :  { %968 = vrot.lane.b32.xlu0 %v1635_v43, %s1535_s18  ;;  %604 = vrot.lane.b32.xlu1 %v1639_v46, %s1507_s29  ;;  %3248 = vst [vmem:[#allocation21_spill] sm:$0xff] %v1989_v15 }
 0x181   :  { %1430 = vset.pattern.permute.xlu0 %v1536_v9  ;;  %v1538_v9 = vmov 39  }
 0x182   :  { %v1976_v27 = vpop.permute.xlu1 %377 }
 0x183   :  { %3245 = vst [vmem:[#allocation18_spill] sm:$0xff] %v1976_v27 }
 0x184   :  { %978 = vperm.xlu0 %1430, %v1604_v3   ;;  %608 = vrot.lane.b32.xlu1 %v1643_v47, %s1507_s29 }
 0x186   :  { %v1983_v21 = vpop.permute.xlu1 %379 }
 0x187   :  { %3247 = vst [vmem:[#allocation20_spill] sm:$0xff] %v1983_v21  ;;  %v1999_v21 = vpop.permute.xlu0 %466 }
 0x188   :  { %989 = vrot.lane.b32.xlu0 %v1633_v42, %s1537_s19  ;;  %627 = vrot.lane.b32.xlu1 %v1633_v42, %s1509_s30  ;;  %3251 = vst [vmem:[#allocation24_spill] sm:$0xff] %v1999_v21 }
 0x189   :  { %1433 = vset.pattern.permute.xlu0 %v1538_v9 }
 0x18a   :  { %v1991_v27 = vpop.permute.xlu1 %383 }
 0x18b   :  { %3249 = vst [vmem:[#allocation22_spill] sm:$0xff] %v1991_v27  ;;  %v2010_v9 = vpop.permute.xlu0 %481  ;;  %v1540_v27 = vmov 40  }
 0x18c   :  { %993 = vrot.lane.b32.xlu0 %v1635_v43, %s1537_s19  ;;  %629 = vrot.lane.b32.xlu1 %v1639_v46, %s1509_s30  ;;  %3253 = vst [vmem:[#allocation26_spill] sm:$0xff] %v2010_v9  ;;  %v1542_v9 = vmov 41  }
 0x18e   :  { %v1997_v12 = vpop.permute.xlu1 %402 }
 0x18f   :  { %3250 = vst [vmem:[#allocation23_spill] sm:$0xff] %v1997_v12 }
 0x190   :  { %1053 = vperm.xlu0 %1433, %v1604_v3   ;;  %633 = vrot.lane.b32.xlu1 %v1643_v47, %s1509_s30 }
 0x192   :  { %v2004_v15 = vpop.permute.xlu1 %404 }
 0x193   :  { %3252 = vst [vmem:[#allocation25_spill] sm:$0xff] %v2004_v15  ;;  %v2019_v15 = vpop.permute.xlu0 %491 }
 0x194   :  { %1018 = vrot.lane.b32.xlu0 %v1635_v43, %s1539_s20  ;;  %652 = vrot.lane.b32.xlu1 %v1633_v42, %s1511_s7  ;;  %3256 = vst [vmem:[#allocation29_spill] sm:$0xff] %v2019_v15  ;;  %v1544_v15 = vmov 42  }
 0x195   :  { %1434 = vset.pattern.permute.xlu0 %v1540_v27 }
 0x196   :  { %v2012_v12 = vpop.permute.xlu1 %408 }
 0x197   :  { %3254 = vst [vmem:[#allocation27_spill] sm:$0xff] %v2012_v12  ;;  %v2029_v12 = vpop.permute.xlu0 %506 }
 0x198   :  { %1078 = vperm.xlu0 %1434, %v1604_v3   ;;  %654 = vrot.lane.b32.xlu1 %v1639_v46, %s1511_s7  ;;  %3258 = vst [vmem:[#allocation31_spill] sm:$0xff] %v2029_v12 }
 0x19a   :  { %v2017_v21 = vpop.permute.xlu1 %427 }
 0x19b   :  { %3255 = vst [vmem:[#allocation28_spill] sm:$0xff] %v2017_v21  ;;  %v2039_v49 = vpop.permute.xlu0 %516 }
 0x19c   :  { %1043 = vrot.lane.b32.xlu0 %v1635_v43, %s1541_s21  ;;  %658 = vrot.lane.b32.xlu1 %v1643_v47, %s1511_s7  ;;  %3261 = vst [vmem:[#allocation34_spill] sm:$0xff] %v2039_v49  ;;  %v1548_v49 = vmov 37  }
 0x19d   :  { %1435 = vset.pattern.permute.xlu0 %v1542_v9  ;;  %v1545_v9 = vmov 25  }
 0x19e   :  { %v2025_v27 = vpop.permute.xlu1 %429 }
 0x19f   :  { %3257 = vst [vmem:[#allocation30_spill] sm:$0xff] %v2025_v27 }
 0x1a0   :  { %1103 = vperm.xlu0 %1435, %v1604_v3   ;;  %678 = vperm.xlu1 %1418, %v1604_v3  }
 0x1a2   :  { %v2031_v21 = vpop.permute.xlu1 %433 }
 0x1a3   :  { %3259 = vst [vmem:[#allocation32_spill] sm:$0xff] %v2031_v21 }
 0x1a4   :  { %1068 = vrot.lane.b32.xlu0 %v1635_v43, %s1543_s22  ;;  %689 = vrot.lane.b32.xlu1 %v1633_v42, %s1514_s8 }
 0x1a5   :  { %1436 = vset.pattern.permute.xlu0 %v1544_v15  ;;  %1419 = vset.pattern.permute.xlu1 %v1545_v9  ;;  %v2049_v15 = vpop.permute.xlu0 %531  ;;  %v1547_v9 = vmov 43  }
 0x1a6   :  { %v2037_v27 = vpop.permute.xlu1 %452  ;;  %3263 = vst [vmem:[#allocation36_spill] sm:$0xff] %v2049_v15 }
 0x1a7   :  { %3260 = vst [vmem:[#allocation33_spill] sm:$0xff] %v2037_v27 }
 0x1a8   :  { %1115 = vperm.xlu0 %1436, %v1604_v3   ;;  %693 = vrot.lane.b32.xlu1 %v1635_v43, %s1514_s8 }
 0x1a9   :  { %v2058_v21 = vpop.permute.xlu0 %541 }
 0x1aa   :  { %v2044_v12 = vpop.permute.xlu1 %454  ;;  %3266 = vst [vmem:[#allocation39_spill] sm:$0xff] %v2058_v21  ;;  %v1551_v21 = vmov 47  }
 0x1ab   :  { %3262 = vst [vmem:[#allocation35_spill] sm:$0xff] %v2044_v12 }
 0x1ac   :  { %1093 = vrot.lane.b32.xlu0 %v1635_v43, %s1546_s23  ;;  %703 = vperm.xlu1 %1419, %v1604_v3  }
 0x1ad   :  { %1437 = vset.pattern.permute.xlu0 %v1547_v9  ;;  %v2067_v15 = vpop.permute.xlu0 %556 }
 0x1ae   :  { %v2051_v27 = vpop.permute.xlu1 %458  ;;  %3268 = vst [vmem:[#allocation41_spill] sm:$0xff] %v2067_v15 }
 0x1af   :  { %3264 = vst [vmem:[#allocation37_spill] sm:$0xff] %v2051_v27 }
 0x1b0   :  { %1127 = vperm.xlu0 %1437, %v1604_v3   ;;  %716 = vrot.lane.b32.xlu1 %v1639_v46, %s1516_s9 }
 0x1b1   :  { %1431 = vset.pattern.permute.xlu1 %v1548_v49 }
 0x1b2   :  { %v2056_v12 = vpop.permute.xlu1 %477 }
 0x1b3   :  { %3265 = vst [vmem:[#allocation38_spill] sm:$0xff] %v2056_v12  ;;  %v2078_v12 = vpop.permute.xlu0 %566 }
 0x1b4   :  { %1440 = vset.pattern.permute.xlu0 %v1549_v36  ;;  %720 = vrot.lane.b32.xlu1 %v1643_v47, %s1516_s9  ;;  %3271 = vst [vmem:[#allocation44_spill] sm:$0xff] %v2078_v12 }
 0x1b5   :  { %1189 = vperm.xlu0 %1440, %v1604_v3  }
 0x1b6   :  { %v2063_v9 = vpop.permute.xlu1 %479 }
 0x1b7   :  { %3267 = vst [vmem:[#allocation40_spill] sm:$0xff] %v2063_v9 }
 0x1b8   :  { %739 = vrot.lane.b32.xlu1 %v1633_v42, %s1517_s10 }
 0x1b9   :  { %1154 = vrot.lane.b32.xlu0 %v1635_v43, %s1550_s24 }
 0x1ba   :  { %v2071_v49 = vpop.permute.xlu1 %483  ;;  %1441 = vset.pattern.permute.xlu0 %v1551_v21  ;;  %v2088_v21 = vpop.permute.xlu0 %581 }
 0x1bb   :  { %3269 = vst [vmem:[#allocation42_spill] sm:$0xff] %v2071_v49  ;;  %v1553_v49 = vmov 48   ;;  %3273 = vst [vmem:[#allocation46_spill] sm:$0xff] %v2088_v21 }
 0x1bc   :  { %741 = vrot.lane.b32.xlu1 %v1639_v46, %s1517_s10 }
 0x1bd   :  { %1214 = vperm.xlu0 %1441, %v1604_v3  }
 0x1be   :  { %v2076_v36 = vpop.permute.xlu1 %502 }
 0x1bf   :  { %3270 = vst [vmem:[#allocation43_spill] sm:$0xff] %v2076_v36 }
 0x1c0   :  { %745 = vrot.lane.b32.xlu1 %v1643_v47, %s1517_s10 }
 0x1c1   :  { %1179 = vrot.lane.b32.xlu0 %v1635_v43, %s1552_s25 }
 0x1c2   :  { %v2084_v15 = vpop.permute.xlu1 %504  ;;  %1442 = vset.pattern.permute.xlu0 %v1553_v49  ;;  %v2100_v49 = vpop.permute.xlu0 %591 }
 0x1c3   :  { %3272 = vst [vmem:[#allocation45_spill] sm:$0xff] %v2084_v15  ;;  %v3276_v15 = vmov 0   ;;  %3277 = vst [vmem:[#allocation49_spill] sm:$0xff] %v2100_v49 }
 0x1c4   :  { %764 = vrot.lane.b32.xlu1 %v1633_v42, %s1519_s1 }
 0x1c5   :  { %1239 = vperm.xlu0 %1442, %v1604_v3  }
 0x1c6   :  { %v2091_v36 = vpop.permute.xlu1 %508  ;;  %v2110_v21 = vpop.permute.xlu0 %606 }
 0x1c7   :  { %3274 = vst [vmem:[#allocation47_spill] sm:$0xff] %v2091_v36  ;;  %3279 = vst [vmem:[#allocation51_spill] sm:$0xff] %v2110_v21 }
 0x1c8   :  { %766 = vrot.lane.b32.xlu1 %v1639_v46, %s1519_s1 }
 0x1c9   :  { %1204 = vrot.lane.b32.xlu0 %v1635_v43, %s1554_s26 }
 0x1ca   :  { %v2097_v12 = vpop.permute.xlu1 %527  ;;  %1443 = vset.pattern.permute.xlu0 %v3276_v15 }
 0x1cb   :  { %3275 = vst [vmem:[#allocation48_spill] sm:$0xff] %v2097_v12 }
 0x1cc   :  { %770 = vrot.lane.b32.xlu1 %v1643_v47, %s1519_s1 }
 0x1cd   :  { %1225 = vrot.lane.b32.xlu0 %v1633_v42, %s1555_s3 }
 0x1ce   :  { %v2106_v3 = vpop.permute.xlu1 %529 }
 0x1cf   :  { %3278 = vst [vmem:[#allocation50_spill] sm:$0xff] %v2106_v3 }
 0x1d0   :  { %789 = vrot.lane.b32.xlu1 %v1633_v42, %s1521_s11 }
 0x1d1   :  { %1229 = vrot.lane.b32.xlu0 %v1635_v43, %s1555_s3 }
 0x1d2   :  { %v2114_v15 = vpop.permute.xlu1 %533 }
 0x1d3   :  { %3280 = vst [vmem:[#allocation52_spill] sm:$0xff] %v2114_v15 }
 0x1d4   :  { %791 = vrot.lane.b32.xlu1 %v1639_v46, %s1521_s11 }
 0x1d6   :  { %v2118_v49 = vpop.permute.xlu1 %552 }
 0x1d7   :  { %3281 = vst [vmem:[#allocation53_spill] sm:$0xff] %v2118_v49 }
 0x1d8   :  { %795 = vrot.lane.b32.xlu1 %v1643_v47, %s1521_s11 }
 0x1da   :  { %v2122_v12 = vpop.permute.xlu1 %554 }
 0x1db   :  { %3282 = vst [vmem:[#allocation54_spill] sm:$0xff] %v2122_v12 }
 0x1dc   :  { %814 = vrot.lane.b32.xlu1 %v1633_v42, %s1523_s12 }
 0x1de   :  { %v2126_v3 = vpop.permute.xlu1 %558 }
 0x1df   :  { %3283 = vst [vmem:[#allocation55_spill] sm:$0xff] %v2126_v3 }
 0x1e0   :  { %816 = vrot.lane.b32.xlu1 %v1639_v46, %s1523_s12 }
 0x1e2   :  { %v2130_v43 = vpop.permute.xlu1 %577 }
 0x1e3   :  { %3284 = vst [vmem:[#allocation56_spill] sm:$0xff] %v2130_v43  ;;  %v2150_v43 = vpop.permute.xlu0 %616 }
 0x1e4   :  { %820 = vrot.lane.b32.xlu1 %v1643_v47, %s1523_s12  ;;  %3289 = vst [vmem:[#allocation61_spill] sm:$0xff] %v2150_v43  ;;  %v3295_v43 = vlaneseq }
 0x1e6   :  { %v2134_v21 = vpop.permute.xlu1 %579  ;;  %v2169_v36 = vand.u32 127, %v3295_v43 }
 0x1e7   :  { %3285 = vst [vmem:[#allocation57_spill] sm:$0xff] %v2134_v21  ;;  %v2158_v15 = vpop.permute.xlu0 %631 }
 0x1e8   :  { %839 = vrot.lane.b32.xlu1 %v1633_v42, %s1525_s13  ;;  %3292 = vst [vmem:[#allocation64_spill] sm:$0xff] %v2158_v15  ;;  %vm110_vm0 = vcmp.lt.s32.totalorder %v2169_v36, 68  ;;  %vm88_vm1 = vcmp.lt.s32.totalorder %v2169_v36, 69  ;;  %vm135_vm2 = vcmp.lt.s32.totalorder %v2169_v36, 67  ;;  %vm160_vm3 = vcmp.lt.s32.totalorder %v2169_v36, 66 }
 0x1e9   :  { %v113_v43 = vsel %vm110_vm0, %v1762_v8, %v1784_v16  ;;  %v114_v15 = vsel %vm110_vm0, %v1795_v19, %v1762_v8  ;;  %v89_v9 = vsel %vm88_vm1, %v1775_v11, %v1756_v6  ;;  %v92_v27 = vsel %vm88_vm1, %v1756_v6, %v1741_v63 }
 0x1ea   :  { %v2138_v49 = vpop.permute.xlu1 %583  ;;  %v139_v6 = vsel %vm135_vm2, %v1782_v14, %v1805_v23  ;;  %vm185_vm4 = vcmp.lt.s32.totalorder %v2169_v36, 65  ;;  %vm210_vm5 = vcmp.lt.s32.totalorder %v2169_v36, 64  ;;  %vm235_vm6 = vcmp.lt.s32.totalorder %v2169_v36, 63 }
 0x1eb   :  { %3286 = vst [vmem:[#allocation58_spill] sm:$0xff] %v2138_v49  ;;  %vm260_vm7 = vcmp.lt.s32.totalorder %v2169_v36, 47  ;;  %vm285_vm8 = vcmp.lt.s32.totalorder %v2169_v36, 46  ;;  %vm310_vm9 = vcmp.lt.s32.totalorder %v2169_v36, 45  ;;  %vm335_vm10 = vcmp.lt.s32.totalorder %v2169_v36, 44 }
 0x1ec   :  { %841 = vrot.lane.b32.xlu1 %v1639_v46, %s1525_s13  ;;  %vm360_vm11 = vcmp.lt.s32.totalorder %v2169_v36, 43  ;;  %vm385_vm12 = vcmp.lt.s32.totalorder %v2169_v36, 42  ;;  %vm410_vm13 = vcmp.lt.s32.totalorder %v2169_v36, 41  ;;  %vm435_vm14 = vcmp.lt.s32.totalorder %v2169_v36, 25 }
 0x1ed   :  { %vm460_vm15 = vcmp.lt.s32.totalorder %v2169_v36, 24 }
 0x1ee   :  { %v2142_v12 = vpop.permute.xlu1 %602 }
 0x1ef   :  { %3287 = vst [vmem:[#allocation59_spill] sm:$0xff] %v2142_v12 }
 0x1f0   :  { %845 = vrot.lane.b32.xlu1 %v1643_v47, %s1525_s13 }
 0x1f2   :  { %v2146_v3 = vpop.permute.xlu1 %604 }
 0x1f3   :  { %3288 = vst [vmem:[#allocation60_spill] sm:$0xff] %v2146_v3  ;;  %v2166_v3 = vpop.permute.xlu0 %641 }
 0x1f4   :  { %864 = vrot.lane.b32.xlu1 %v1633_v42, %s1527_s14  ;;  %3294 = vst [vmem:[#allocation66_spill] sm:$0xff] %v2166_v3  ;;  %v112_v3 = vsel %vm110_vm0, %v1784_v16, %v1769_v10  ;;  %v137_v16 = vsel %vm135_vm2, %v1777_v13, %v1816_v26 }
 0x1f6   :  { %v2152_v21 = vpop.permute.xlu1 %608 }
 0x1f7   :  { %3290 = vst [vmem:[#allocation62_spill] sm:$0xff] %v2152_v21 }
 0x1f8   :  { %866 = vrot.lane.b32.xlu1 %v1639_v46, %s1527_s14 }
 0x1fa   :  { %v2156_v49 = vpop.permute.xlu1 %627 }
 0x1fb   :  { %3291 = vst [vmem:[#allocation63_spill] sm:$0xff] %v2156_v49  ;;  %v2178_v49 = vpop.permute.xlu0 %656 }
 0x1fc   :  { %870 = vrot.lane.b32.xlu1 %v1643_v47, %s1527_s14  ;;  %3297 = vst [vmem:[#allocation68_spill] sm:$0xff] %v2178_v49  ;;  %v111_v49 = vsel %vm110_vm0, %v1769_v10, %v1795_v19  ;;  %v120_v10 = vmul.f32 %v1734_v60, %v113_v43  ;;  %v121_v19 = vmul.f32 %v1734_v60, %v112_v3  ;;  %vm485_vm0 = vcmp.lt.s32.totalorder %v2169_v36, 23 }
 0x1fe   :  { %v2162_v12 = vpop.permute.xlu1 %629 }
 0x1ff   :  { %3293 = vst [vmem:[#allocation65_spill] sm:$0xff] %v2162_v12  ;;  %v91_v12 = vsel %vm88_vm1, %v1741_v63, %v1749_v4  ;;  %v136_v63 = vsel %vm135_vm2, %v1816_v26, %v1782_v14  ;;  %v2228_v14 = vpop.permute.xlu0 %666 }
 0x200   :  { %889 = vrot.lane.b32.xlu1 %v1633_v42, %s1529_s15  ;;  %v99_v3 = vmul.f32 %v1690_v50, %v91_v12 }
 0x202   :  { %v2173_v21 = vpop.permute.xlu1 %633  ;;  %v124_v0 = vadd.f32 %v120_v10, %v99_v3  ;;  %v164_v10 = vsel %vm160_vm3, %v1803_v22, %v1790_v18 }
 0x203   :  { %3296 = vst [vmem:[#allocation67_spill] sm:$0xff] %v2173_v21  ;;  %v90_v21 = vsel %vm88_vm1, %v1749_v4, %v1775_v11  ;;  %v138_v4 = vsel %vm135_vm2, %v1805_v23, %v1777_v13  ;;  %v119_v11 = vmul.f32 %v1734_v60, %v114_v15  ;;  %v122_v13 = vmul.f32 %v1734_v60, %v111_v49 }
 0x204   :  { %891 = vrot.lane.b32.xlu1 %v1639_v46, %s1529_s15  ;;  %v100_v26 = vmul.f32 %v1690_v50, %v90_v21  ;;  %v145_v43 = vmul.f32 %v1696_v52, %v138_v4  ;;  %v98_v23 = vmul.f32 %v1690_v50, %v92_v27  ;;  %v101_v15 = vmul.f32 %v1690_v50, %v89_v9 }
 0x205   :  { %v144_v60 = vmul.f32 %v1696_v52, %v139_v6  ;;  %v147_v49 = vmul.f32 %v1696_v52, %v136_v63  ;;  %v162_v50 = vsel %vm160_vm3, %v1797_v20, %v1826_v30  ;;  %v161_v4 = vsel %vm160_vm3, %v1826_v30, %v1803_v22 }
 0x206   :  { %v2206_v8 = vpop.permute.xlu1 %652  ;;  %v125_v2 = vadd.f32 %v121_v19, %v100_v26  ;;  %v123_v12 = vadd.f32 %v119_v11, %v98_v23  ;;  %v126_v21 = vadd.f32 %v122_v13, %v101_v15  ;;  %v149_v9 = vadd.f32 %v145_v43, %v124_v0 }
 0x207   :  { %3298 = vst [vmem:[#allocation69_spill] sm:$0xff] %v2206_v8  ;;  %v146_v8 = vmul.f32 %v1696_v52, %v137_v16  ;;  %v163_v52 = vsel %vm160_vm3, %v1790_v18, %v1797_v20  ;;  %v2261_v0 = vsel %vm185_vm4, %v1818_v28, %v1838_v32  ;;  %v2267_v20 = vsel %vm185_vm4, %v1810_v25, %v1818_v28 }
 0x208   :  { %895 = vrot.lane.b32.xlu1 %v1643_v47, %s1529_s15  ;;  %v148_v19 = vadd.f32 %v144_v60, %v123_v12  ;;  %v151_v63 = vadd.f32 %v147_v49, %v126_v21  ;;  %v170_v30 = vmul.f32 %v1705_v53, %v163_v52  ;;  %v171_v18 = vmul.f32 %v1705_v53, %v162_v50 }
 0x209   :  { %v150_v16 = vadd.f32 %v146_v8, %v125_v2  ;;  %v2275_v22 = vsel %vm185_vm4, %v1838_v32, %v1824_v29  ;;  %v2281_v2 = vsel %vm185_vm4, %v1824_v29, %v1810_v25  ;;  %v2283_v8 = vpop.permute.xlu0 %691  ;;  %v169_v28 = vmul.f32 %v1705_v53, %v164_v10 }
 0x20a   :  { %v2246_v27 = vpop.permute.xlu1 %654  ;;  %3299 = vst [vmem:[#allocation70_spill] sm:$0xff] %v2275_v22  ;;  %3300 = vst [vmem:[#allocation71_spill] sm:$0xff] %v2281_v2  ;;  %v172_v6 = vmul.f32 %v1705_v53, %v161_v4  ;;  %v2293_v32 = vsel %vm210_vm5, %v1840_v33, %v1847_v35  ;;  %v2299_v25 = vsel %vm210_vm5, %v1832_v31, %v1840_v33  ;;  %vm510_vm1 = vcmp.lt.s32.totalorder %v2169_v36, 22 }
 0x20b   :  { %3301 = vst [vmem:[#allocation72_spill] sm:$0xff] %v2293_v32  ;;  %3302 = vst [vmem:[#allocation73_spill] sm:$0xff] %v2299_v25  ;;  %v195_v29 = vmul.f32 %v1710_v55, %v2267_v20  ;;  %v196_v11 = vmul.f32 %v1710_v55, %v2261_v0  ;;  %v2309_v53 = vsel %vm210_vm5, %v1847_v35, %v1845_v34  ;;  %vm535_vm2 = vcmp.lt.s32.totalorder %v2169_v36, 21 }
 0x20c   :  { %914 = vrot.lane.b32.xlu1 %v1633_v42, %s1531_s16  ;;  %3303 = vst [vmem:[#allocation74_spill] sm:$0xff] %v2309_v53  ;;  %v2315_v13 = vsel %vm210_vm5, %v1845_v34, %v1832_v31  ;;  %v194_v33 = vmul.f32 %v1710_v55, %v2281_v2  ;;  %v197_v3 = vmul.f32 %v1710_v55, %v2275_v22  ;;  %vm560_vm3 = vcmp.lt.s32.totalorder %v2169_v36, 20 }
 0x20d   :  { %3304 = vst [vmem:[#allocation75_spill] sm:$0xff] %v2315_v13  ;;  %v2325_v26 = vsel %vm235_vm6, %v1860_v39, %v1858_v38  ;;  %v2331_v35 = vsel %vm235_vm6, %v1853_v37, %v1860_v39  ;;  %v174_v34 = vadd.f32 %v170_v30, %v149_v9  ;;  %v175_v43 = vadd.f32 %v171_v18, %v150_v16  ;;  %v2349_v9 = vpop.permute.xlu0 %695 }
 0x20e   :  { %3305 = vst [vmem:[#allocation76_spill] sm:$0xff] %v2325_v26  ;;  %3306 = vst [vmem:[#allocation77_spill] sm:$0xff] %v2331_v35  ;;  %v2333_v31 = vpop.permute.xlu1 %658  ;;  %v220_v23 = vmul.f32 %v1719_v57, %v2299_v25  ;;  %v221_v55 = vmul.f32 %v1719_v57, %v2293_v32  ;;  %v173_v15 = vadd.f32 %v169_v28, %v148_v19  ;;  %vm585_vm4 = vcmp.lt.s32.totalorder %v2169_v36, 19  ;;  %v3362_v25 = vld [vmem:[#allocation49_spill] sm:$0xff] }
 0x20f   :  { %v176_v60 = vadd.f32 %v172_v6, %v151_v63  ;;  %v219_v49 = vmul.f32 %v1719_v57, %v2315_v13  ;;  %v222_v39 = vmul.f32 %v1719_v57, %v2309_v53  ;;  %v199_v12 = vadd.f32 %v195_v29, %v174_v34 }
 0x210   :  { %916 = vrot.lane.b32.xlu1 %v1639_v46, %s1531_s16  ;;  %v200_v21 = vadd.f32 %v196_v11, %v175_v43  ;;  %v245_v50 = vmul.f32 %v1725_v59, %v2331_v35  ;;  %v246_v52 = vmul.f32 %v1725_v59, %v2325_v26  ;;  %v198_v16 = vadd.f32 %v194_v33, %v173_v15 }
 0x211   :  { %v201_v4 = vadd.f32 %v197_v3, %v176_v60  ;;  %v224_v19 = vadd.f32 %v220_v23, %v199_v12  ;;  %v2359_v63 = vsel %vm235_vm6, %v1858_v38, %v1866_v41  ;;  %v2365_v30 = vsel %vm235_vm6, %v1866_v41, %v1853_v37  ;;  %v2411_v23 = vpop.permute.xlu0 %714 }
 0x212   :  { %v225_v57 = vadd.f32 %v221_v55, %v200_v21  ;;  %3307 = vst [vmem:[#allocation78_spill] sm:$0xff] %v2359_v63  ;;  %3308 = vst [vmem:[#allocation79_spill] sm:$0xff] %v2365_v30  ;;  %v223_v18 = vadd.f32 %v219_v49, %v198_v16  ;;  %v262_v6 = vsel %vm260_vm7, %v1881_v51, %v1868_v44  ;;  %vm610_vm5 = vcmp.lt.s32.totalorder %v2169_v36, 3 }
 0x213   :  { %v226_v28 = vadd.f32 %v222_v39, %v201_v4  ;;  %v263_v38 = vsel %vm260_vm7, %v1873_v45, %v1881_v51  ;;  %v249_v29 = vadd.f32 %v245_v50, %v224_v19  ;;  %v261_v41 = vsel %vm260_vm7, %v1868_v44, %v1886_v54  ;;  %v1250_v50 = vld [vmem:[%s3147_s5] sm:$0xff] }
 0x214   :  { %920 = vrot.lane.b32.xlu1 %v1643_v47, %s1531_s16  ;;  %v250_v37 = vadd.f32 %v246_v52, %v225_v57  ;;  %v264_v11 = vsel %vm260_vm7, %v1886_v54, %v1873_v45  ;;  %v244_v33 = vmul.f32 %v1725_v59, %v2365_v30  ;;  %v247_v51 = vmul.f32 %v1725_v59, %v2359_v63 }
 0x215   :  { %v287_v3 = vsel %vm285_vm8, %v1901_v7, %v1879_v48  ;;  %v288_v44 = vsel %vm285_vm8, %v1894_v62, %v1901_v7  ;;  %v270_v45 = vmul.f32 %v1736_v61, %v263_v38  ;;  %v271_v54 = vmul.f32 %v1736_v61, %v262_v6  ;;  %1253 = vperm.xlu0 %1443, %v1250_v50  }
 0x216   :  { %v286_v59 = vsel %vm285_vm8, %v1879_v48, %v1907_v17  ;;  %v289_v43 = vsel %vm285_vm8, %v1907_v17, %v1894_v62  ;;  %v269_v7 = vmul.f32 %v1736_v61, %v264_v11  ;;  %v272_v55 = vmul.f32 %v1736_v61, %v261_v41  ;;  %v3311_v11 = vld [vmem:[#allocation8_spill] sm:$0xff] }
 0x217   :  { %v312_v15 = vsel %vm310_vm9, %v1922_v40, %v1888_v56  ;;  %v313_v48 = vsel %vm310_vm9, %v1914_v24, %v1922_v40  ;;  %v295_v62 = vmul.f32 %v1743_v1, %v288_v44  ;;  %v296_v17 = vmul.f32 %v1743_v1, %v287_v3  ;;  %v3312_v44 = vld [vmem:[#allocation12_spill] sm:$0xff] }
 0x218   :  { %939 = vrot.lane.b32.xlu1 %v1633_v42, %s1533_s17  ;;  %v311_v60 = vsel %vm310_vm9, %v1888_v56, %v1929_v58  ;;  %v314_v61 = vsel %vm310_vm9, %v1929_v58, %v1914_v24  ;;  %v248_v49 = vadd.f32 %v244_v33, %v223_v18  ;;  %v251_v39 = vadd.f32 %v247_v51, %v226_v28  ;;  %v2450_v28 = vpop.permute.xlu0 %718 }
 0x219   :  { %v294_v12 = vmul.f32 %v1743_v1, %v289_v43  ;;  %v297_v40 = vmul.f32 %v1743_v1, %v286_v59  ;;  %v274_v52 = vadd.f32 %v270_v45, %v249_v29  ;;  %v275_v16 = vadd.f32 %v271_v54, %v250_v37  ;;  %v3309_v29 = vld [vmem:[#allocation4_spill] sm:$0xff]  ;;  %v3310_v37 = vld [vmem:[#allocation10_spill] sm:$0xff] }
 0x21a   :  { %v320_v56 = vmul.f32 %v1754_v5, %v313_v48  ;;  %v321_v4 = vmul.f32 %v1754_v5, %v312_v15  ;;  %v273_v24 = vadd.f32 %v269_v7, %v248_v49  ;;  %v276_v58 = vadd.f32 %v272_v55, %v251_v39  ;;  %v3313_v7 = vld [vmem:[#allocation5_spill] sm:$0xff]  ;;  %v3314_v55 = vld [vmem:[#allocation15_spill] sm:$0xff] }
 0x21b   :  { %v2353_v10 = vpop.permute.xlu1 %678  ;;  %v319_v19 = vmul.f32 %v1754_v5, %v314_v61  ;;  %v322_v1 = vmul.f32 %v1754_v5, %v311_v60  ;;  %v299_v57 = vadd.f32 %v295_v62, %v274_v52  ;;  %v300_v18 = vadd.f32 %v296_v17, %v275_v16  ;;  %v3315_v48 = vld [vmem:[#allocation13_spill] sm:$0xff]  ;;  %v3316_v17 = vld [vmem:[#allocation3_spill] sm:$0xff]  ;;  %v3319_v16 = vld [vmem:[#allocation20_spill] sm:$0xff] }
 0x21c   :  { %941 = vrot.lane.b32.xlu1 %v1639_v46, %s1533_s17  ;;  %v298_v6 = vadd.f32 %v294_v12, %v273_v24  ;;  %v301_v38 = vadd.f32 %v297_v40, %v276_v58  ;;  %v337_v41 = vsel %vm335_vm10, %v3310_v37, %v3309_v29  ;;  %v338_v5 = vsel %vm335_vm10, %v3311_v11, %v3310_v37  ;;  %v3317_v49 = vld [vmem:[#allocation17_spill] sm:$0xff]  ;;  %v3318_v52 = vld [vmem:[#allocation7_spill] sm:$0xff] }
 0x21d   :  { %v324_v51 = vadd.f32 %v320_v56, %v299_v57  ;;  %v325_v3 = vadd.f32 %v321_v4, %v300_v18  ;;  %v336_v45 = vsel %vm335_vm10, %v3309_v29, %v3312_v44  ;;  %v339_v54 = vsel %vm335_vm10, %v3312_v44, %v3311_v11  ;;  %v3320_v4 = vld [vmem:[#allocation18_spill] sm:$0xff]  ;;  %v2514_v29 = vpop.permute.xlu0 %728  ;;  %v3323_v11 = vld [vmem:[#allocation11_spill] sm:$0xff] }
 0x21e   :  { %v323_v59 = vadd.f32 %v319_v19, %v298_v6  ;;  %v326_v43 = vadd.f32 %v322_v1, %v301_v38  ;;  %v362_v15 = vsel %vm360_vm11, %v3314_v55, %v3313_v7  ;;  %v363_v62 = vsel %vm360_vm11, %v3315_v48, %v3314_v55  ;;  %v3321_v19 = vld [vmem:[#allocation6_spill] sm:$0xff] }
 0x21f   :  { %v2399_v34 = vpop.permute.xlu1 %689  ;;  %v345_v60 = vmul.f32 %v3316_v17, %v338_v5  ;;  %v346_v61 = vmul.f32 %v3316_v17, %v337_v41  ;;  %v361_v39 = vsel %vm360_vm11, %v3313_v7, %v3317_v49  ;;  %v364_v12 = vsel %vm360_vm11, %v3317_v49, %v3315_v48  ;;  %v3322_v18 = vld [vmem:[#allocation22_spill] sm:$0xff]  ;;  %v3324_v5 = vld [vmem:[#allocation25_spill] sm:$0xff] }
 0x220   :  { %945 = vrot.lane.b32.xlu1 %v1643_v47, %s1533_s17  ;;  %v344_v40 = vmul.f32 %v3316_v17, %v339_v54  ;;  %v347_v50 = vmul.f32 %v3316_v17, %v336_v45  ;;  %v387_v56 = vsel %vm385_vm12, %v3319_v16, %v3318_v52  ;;  %v388_v24 = vsel %vm385_vm12, %v3320_v4, %v3319_v16  ;;  %v3325_v45 = vld [vmem:[#allocation23_spill] sm:$0xff] }
 0x221   :  { %v370_v1 = vmul.f32 %v3321_v19, %v363_v62  ;;  %v371_v57 = vmul.f32 %v3321_v19, %v362_v15  ;;  %v386_v6 = vsel %vm385_vm12, %v3318_v52, %v3322_v18  ;;  %v389_v38 = vsel %vm385_vm12, %v3322_v18, %v3320_v4  ;;  %v3326_v15 = vld [vmem:[#allocation9_spill] sm:$0xff] }
 0x222   :  { %v369_v37 = vmul.f32 %v3321_v19, %v364_v12  ;;  %v372_v41 = vmul.f32 %v3321_v19, %v361_v39  ;;  %v412_v44 = vsel %vm410_vm13, %v3324_v5, %v3323_v11  ;;  %v413_v54 = vsel %vm410_vm13, %v3325_v45, %v3324_v5  ;;  %v3327_v19 = vld [vmem:[#allocation14_spill] sm:$0xff] }
 0x223   :  { %v2437_v21 = vpop.permute.xlu1 %693  ;;  %v349_v7 = vadd.f32 %v345_v60, %v324_v51  ;;  %v350_v55 = vadd.f32 %v346_v61, %v325_v3  ;;  %v395_v48 = vmul.f32 %v3326_v15, %v388_v24  ;;  %v396_v62 = vmul.f32 %v3326_v15, %v387_v56  ;;  %v2540_v51 = vld [vmem:[%s3144_s2] sm:$0xff]  ;;  %v3330_v24 = vld [vmem:[#allocation28_spill] sm:$0xff] }
 0x224   :  { %964 = vrot.lane.b32.xlu1 %v1633_v42, %s1535_s18  ;;  %v348_v17 = vadd.f32 %v344_v40, %v323_v59  ;;  %v351_v49 = vadd.f32 %v347_v50, %v326_v43  ;;  %v394_v39 = vmul.f32 %v3326_v15, %v389_v38  ;;  %v397_v12 = vmul.f32 %v3326_v15, %v386_v6  ;;  %v3328_v43 = vld [vmem:[#allocation27_spill] sm:$0xff]  ;;  %v3329_v56 = vld [vmem:[#allocation30_spill] sm:$0xff] }
 0x225   :  { %v374_v16 = vadd.f32 %v370_v1, %v349_v7  ;;  %v375_v4 = vadd.f32 %v371_v57, %v350_v55  ;;  %v420_v18 = vmul.f32 %v3327_v19, %v413_v54  ;;  %v421_v5 = vmul.f32 %v3327_v19, %v412_v44  ;;  %v2555_v57 = vpop.permute.xlu0 %743  ;;  %v3332_v44 = vld [vmem:[#allocation32_spill] sm:$0xff] }
 0x226   :  { %v373_v3 = vadd.f32 %v369_v37, %v348_v17  ;;  %v376_v59 = vadd.f32 %v372_v41, %v351_v49  ;;  %v414_v60 = vsel %vm410_vm13, %v3328_v43, %v3325_v45  ;;  %v411_v50 = vsel %vm410_vm13, %v3323_v11, %v3328_v43  ;;  %v3331_v37 = vld [vmem:[#allocation16_spill] sm:$0xff]  ;;  %v3333_v17 = vld [vmem:[#allocation19_spill] sm:$0xff] }
 0x227   :  { %v2461_v33 = vpop.permute.xlu1 %703  ;;  %v399_v61 = vadd.f32 %v395_v48, %v374_v16  ;;  %v400_v40 = vadd.f32 %v396_v62, %v375_v4  ;;  %v438_v1 = vsel %vm435_vm14, %v3330_v24, %v3329_v56  ;;  %v437_v41 = vsel %vm435_vm14, %v3329_v56, %v3331_v37  ;;  %v3336_v4 = vld [vmem:[#allocation33_spill] sm:$0xff]  ;;  %v3340_v56 = vld [vmem:[#allocation38_spill] sm:$0xff] }
 0x228   :  { %966 = vrot.lane.b32.xlu1 %v1639_v46, %s1535_s18  ;;  %v398_v6 = vadd.f32 %v394_v39, %v373_v3  ;;  %v401_v38 = vadd.f32 %v397_v12, %v376_v59  ;;  %v439_v11 = vsel %vm435_vm14, %v3332_v44, %v3330_v24  ;;  %v419_v55 = vmul.f32 %v3327_v19, %v414_v60  ;;  %v3334_v39 = vld [vmem:[#allocation21_spill] sm:$0xff]  ;;  %v3335_v12 = vld [vmem:[#allocation35_spill] sm:$0xff] }
 0x229   :  { %v424_v54 = vadd.f32 %v420_v18, %v399_v61  ;;  %v425_v7 = vadd.f32 %v421_v5, %v400_v40  ;;  %v436_v15 = vsel %vm435_vm14, %v3331_v37, %v3332_v44  ;;  %v1556_v48 = vmov 38   ;;  %v3337_v59 = vld [vmem:[#allocation37_spill] sm:$0xff]  ;;  %v3338_v61 = vld [vmem:[#allocation26_spill] sm:$0xff]  ;;  %v3339_v40 = vld [vmem:[#allocation40_spill] sm:$0xff] }
 0x22a   :  { %v422_v62 = vmul.f32 %v3327_v19, %v411_v50  ;;  %v445_v49 = vmul.f32 %v3333_v17, %v438_v1  ;;  %v462_v16 = vsel %vm460_vm15, %v3335_v12, %v3334_v39  ;;  %v463_v18 = vsel %vm460_vm15, %v3336_v4, %v3335_v12  ;;  %v3341_v37 = vld [vmem:[#allocation24_spill] sm:$0xff] }
 0x22b   :  { %v2502_v58 = vpop.permute.xlu1 %716  ;;  %v446_v5 = vmul.f32 %v3333_v17, %v437_v41  ;;  %v444_v3 = vmul.f32 %v3333_v17, %v439_v11  ;;  %v461_v19 = vsel %vm460_vm15, %v3334_v39, %v3337_v59  ;;  %v464_v43 = vsel %vm460_vm15, %v3337_v59, %v3336_v4  ;;  %v2608_v11 = vpop.permute.xlu0 %753 }
 0x22c   :  { %970 = vrot.lane.b32.xlu1 %v1643_v47, %s1535_s18  ;;  %v447_v60 = vmul.f32 %v3333_v17, %v436_v15  ;;  %v487_v50 = vsel %vm485_vm0, %v3339_v40, %v3338_v61  ;;  %v488_v24 = vsel %vm485_vm0, %v3340_v56, %v3339_v40  ;;  %v470_v41 = vmul.f32 %v3341_v37, %v463_v18  ;;  %v3343_v40 = vld [vmem:[#allocation29_spill] sm:$0xff] }
 0x22d   :  { %v471_v44 = vmul.f32 %v3341_v37, %v462_v16  ;;  %v423_v39 = vadd.f32 %v419_v55, %v398_v6  ;;  %v426_v12 = vadd.f32 %v422_v62, %v401_v38  ;;  %v469_v4 = vmul.f32 %v3341_v37, %v464_v43 }
 0x22e   :  { %v472_v18 = vmul.f32 %v3341_v37, %v461_v19  ;;  %v449_v16 = vadd.f32 %v445_v49, %v424_v54  ;;  %v450_v59 = vadd.f32 %v446_v5, %v425_v7  ;;  %v495_v30 = vmul.f32 %v3343_v40, %v488_v24  ;;  %v3344_v49 = vld [vmem:[#allocation31_spill] sm:$0xff]  ;;  %v3345_v5 = vld [vmem:[#allocation45_spill] sm:$0xff] }
 0x22f   :  { %v2533_v52 = vpop.permute.xlu1 %720  ;;  %v1557_v63 = vmov 44   ;;  %v448_v26 = vadd.f32 %v444_v3, %v423_v39  ;;  %v451_v35 = vadd.f32 %v447_v60, %v426_v12  ;;  %v3346_v3 = vld [vmem:[#allocation43_spill] sm:$0xff]  ;;  %v3351_v12 = vld [vmem:[#allocation34_spill] sm:$0xff]  ;;  %vm635_vm6 = vcmp.lt.s32.totalorder %v2169_v36, 2 }
 0x230   :  { %1003 = vperm.xlu1 %1431, %v2540_v51   ;;  %v474_v62 = vadd.f32 %v470_v41, %v449_v16  ;;  %v475_v19 = vadd.f32 %v471_v44, %v450_v59  ;;  %v513_v43 = vsel %vm510_vm1, %v3346_v3, %v3345_v5  ;;  %v3347_v24 = vld [vmem:[#allocation47_spill] sm:$0xff]  ;;  %v3348_v44 = vld [vmem:[#allocation36_spill] sm:$0xff]  ;;  %vm660_vm7 = vcmp.lt.s32.totalorder %v2169_v36, 1 }
 0x231   :  { %v473_v54 = vadd.f32 %v469_v4, %v448_v26  ;;  %v476_v7 = vadd.f32 %v472_v18, %v451_v35  ;;  %v511_v26 = vsel %vm510_vm1, %v3344_v49, %v3347_v24  ;;  %v514_v35 = vsel %vm510_vm1, %v3347_v24, %v3346_v3  ;;  %v3352_v16 = vld [vmem:[#allocation52_spill] sm:$0xff]  ;;  %v3357_v3 = vld [vmem:[#allocation55_spill] sm:$0xff] }
 0x232   :  { %v499_v60 = vadd.f32 %v495_v30, %v474_v62  ;;  %v520_v4 = vmul.f32 %v3351_v12, %v513_v43  ;;  %v536_v59 = vsel %vm535_vm2, %v3348_v44, %v3352_v16  ;;  %v3354_v62 = vld [vmem:[#allocation54_spill] sm:$0xff]  ;;  %vm697_vm8 = vcmp.lt.s32.totalorder %v2169_v36, 127 }
 0x233   :  { %v2566_v45 = vpop.permute.xlu1 %739  ;;  %vm722_vm9 = vcmp.lt.s32.totalorder %v2169_v36, 126  ;;  %vm747_vm10 = vcmp.lt.s32.totalorder %v2169_v36, 125  ;;  %vm772_vm11 = vcmp.lt.s32.totalorder %v2169_v36, 109  ;;  %vm797_vm12 = vcmp.lt.s32.totalorder %v2169_v36, 108 }
 0x234   :  { %1432 = vset.pattern.permute.xlu1 %v1556_v48  ;;  %v3342_v48 = vld [vmem:[#allocation42_spill] sm:$0xff]  ;;  %vm822_vm13 = vcmp.lt.s32.totalorder %v2169_v36, 107  ;;  %vm847_vm14 = vcmp.lt.s32.totalorder %v2169_v36, 106  ;;  %vm872_vm15 = vcmp.lt.s32.totalorder %v2169_v36, 105 }
 0x235   :  { %1028 = vperm.xlu1 %1432, %v2540_v51   ;;  %v486_v15 = vsel %vm485_vm0, %v3338_v61, %v3342_v48  ;;  %v489_v17 = vsel %vm485_vm0, %v3342_v48, %v3340_v56  ;;  %v496_v61 = vmul.f32 %v3343_v40, %v487_v50  ;;  %v2640_v56 = vpop.permute.xlu0 %768  ;;  %v3349_v48 = vld [vmem:[#allocation50_spill] sm:$0xff]  ;;  %vm897_vm0 = vcmp.lt.s32.totalorder %v2169_v36, 104 }
 0x236   :  { %v494_v6 = vmul.f32 %v3343_v40, %v489_v17  ;;  %v497_v38 = vmul.f32 %v3343_v40, %v486_v15  ;;  %v537_v30 = vsel %vm535_vm2, %v3349_v48, %v3348_v44  ;;  %v3350_v15 = vld [vmem:[#allocation48_spill] sm:$0xff]  ;;  %v3358_v44 = vld [vmem:[#allocation46_spill] sm:$0xff] }
 0x237   :  { %v2604_v1 = vpop.permute.xlu1 %741  ;;  %v500_v50 = vadd.f32 %v496_v61, %v475_v19  ;;  %v538_v17 = vsel %vm535_vm2, %v3350_v15, %v3349_v48  ;;  %v539_v40 = vsel %vm535_vm2, %v3352_v16, %v3350_v15  ;;  %v519_v61 = vmul.f32 %v3351_v12, %v514_v35  ;;  %v3359_v48 = vld [vmem:[#allocation57_spill] sm:$0xff] }
 0x238   :  { %v498_v37 = vadd.f32 %v494_v6, %v473_v54  ;;  %v501_v41 = vadd.f32 %v497_v38, %v476_v7  ;;  %v522_v6 = vmul.f32 %v3351_v12, %v511_v26  ;;  %v3353_v38 = vld [vmem:[#allocation41_spill] sm:$0xff]  ;;  %v587_v15 = vsel %vm585_vm4, %v3359_v48, %v3358_v44 }
 0x239   :  { %991 = vrot.lane.b32.xlu1 %v1639_v46, %s1537_s19  ;;  %v562_v19 = vsel %vm560_vm3, %v3354_v62, %v3353_v38  ;;  %v3355_v54 = vld [vmem:[#allocation53_spill] sm:$0xff]  ;;  %v561_v43 = vsel %vm560_vm3, %v3353_v38, %v3357_v3  ;;  %v2705_v16 = vpop.permute.xlu0 %778  ;;  %v524_v38 = vadd.f32 %v520_v4, %v499_v60  ;;  %v596_v60 = vmul.f32 %v3362_v25, %v587_v15 }
 0x23a   :  { %1438 = vset.pattern.permute.xlu1 %v1557_v63  ;;  %v512_v63 = vsel %vm510_vm1, %v3345_v5, %v3344_v49  ;;  %v563_v7 = vsel %vm560_vm3, %v3355_v54, %v3354_v62  ;;  %v3356_v49 = vld [vmem:[#allocation39_spill] sm:$0xff]  ;;  %v564_v24 = vsel %vm560_vm3, %v3357_v3, %v3355_v54  ;;  %v3361_v54 = vld [vmem:[#allocation44_spill] sm:$0xff]  ;;  %v526_v3 = vadd.f32 %v522_v6, %v501_v41 }
 0x23b   :  { %v2626_v55 = vpop.permute.xlu1 %745  ;;  %v521_v18 = vmul.f32 %v3351_v12, %v512_v63  ;;  %v545_v5 = vmul.f32 %v3356_v49, %v538_v17  ;;  %v546_v63 = vmul.f32 %v3356_v49, %v537_v30  ;;  %v544_v26 = vmul.f32 %v3356_v49, %v539_v40  ;;  %v3360_v30 = vld [vmem:[#allocation56_spill] sm:$0xff] }
 0x23c   :  { %v547_v35 = vmul.f32 %v3356_v49, %v536_v59  ;;  %v588_v17 = vsel %vm585_vm4, %v3360_v30, %v3359_v48  ;;  %v570_v40 = vmul.f32 %v3361_v54, %v563_v7  ;;  %v571_v59 = vmul.f32 %v3361_v54, %v562_v19 }
 0x23d   :  { %995 = vrot.lane.b32.xlu1 %v1643_v47, %s1537_s19  ;;  %v525_v62 = vadd.f32 %v521_v18, %v500_v50  ;;  %v523_v49 = vadd.f32 %v519_v61, %v498_v37  ;;  %v569_v13 = vmul.f32 %v3361_v54, %v564_v24  ;;  %v572_v53 = vmul.f32 %v3361_v54, %v561_v43  ;;  %v3363_v61 = vld [vmem:[#allocation58_spill] sm:$0xff]  ;;  %v3365_v43 = vld [vmem:[#allocation60_spill] sm:$0xff]  ;;  %v3369_v54 = vld [vmem:[#allocation65_spill] sm:$0xff] }
 0x23e   :  { %v549_v48 = vadd.f32 %v545_v5, %v524_v38  ;;  %v595_v2 = vmul.f32 %v3362_v25, %v588_v17  ;;  %v551_v4 = vadd.f32 %v547_v35, %v526_v3  ;;  %v586_v6 = vsel %vm585_vm4, %v3358_v44, %v3363_v61  ;;  %v2737_v35 = vpop.permute.xlu0 %793  ;;  %v3371_v3 = vld [vmem:[#allocation61_spill] sm:$0xff] }
 0x23f   :  { %v2659_v39 = vpop.permute.xlu1 %764  ;;  %v550_v32 = vadd.f32 %v546_v63, %v525_v62  ;;  %v548_v50 = vadd.f32 %v544_v26, %v523_v49  ;;  %v589_v19 = vsel %vm585_vm4, %v3363_v61, %v3360_v30  ;;  %v3364_v63 = vld [vmem:[#allocation51_spill] sm:$0xff]  ;;  %v3367_v30 = vld [vmem:[#allocation62_spill] sm:$0xff]  ;;  %v597_v38 = vmul.f32 %v3362_v25, %v586_v6  ;;  %v3368_v62 = vld [vmem:[#allocation64_spill] sm:$0xff] }
 0x240   :  { %v574_v41 = vadd.f32 %v570_v40, %v549_v48  ;;  %v576_v5 = vadd.f32 %v572_v53, %v551_v4  ;;  %v612_v24 = vsel %vm610_vm5, %v3365_v43, %v3364_v63  ;;  %v3366_v26 = vld [vmem:[#allocation59_spill] sm:$0xff]  ;;  %v611_v53 = vsel %vm610_vm5, %v3364_v63, %v3367_v30  ;;  %v3373_v61 = vld [vmem:[#allocation68_spill] sm:$0xff] }
 0x241   :  { %1014 = vrot.lane.b32.xlu1 %v1633_v42, %s1539_s20  ;;  %v575_v18 = vadd.f32 %v571_v59, %v550_v32  ;;  %v573_v7 = vadd.f32 %v569_v13, %v548_v50  ;;  %v613_v32 = vsel %vm610_vm5, %v3366_v26, %v3365_v43  ;;  %v614_v13 = vsel %vm610_vm5, %v3367_v30, %v3366_v26  ;;  %v3370_v40 = vld [vmem:[#allocation63_spill] sm:$0xff]  ;;  %v3375_v43 = vld [vmem:[#allocation66_spill] sm:$0xff] }
 0x242   :  { %v599_v44 = vadd.f32 %v595_v2, %v574_v41  ;;  %v594_v17 = vmul.f32 %v3362_v25, %v589_v19  ;;  %v637_v2 = vsel %vm635_vm6, %v3369_v54, %v3368_v62  ;;  %v638_v59 = vsel %vm635_vm6, %v3370_v40, %v3369_v54  ;;  %v3372_v50 = vld [vmem:[#allocation67_spill] sm:$0xff]  ;;  %v3374_v19 = vld [vmem:[#allocation69_spill] sm:$0xff] }
 0x243   :  { %v2703_v12 = vpop.permute.xlu1 %766  ;;  %v600_v15 = vadd.f32 %v596_v60, %v575_v18  ;;  %v620_v48 = vmul.f32 %v3371_v3, %v613_v32  ;;  %v621_v60 = vmul.f32 %v3371_v3, %v612_v24  ;;  %v636_v25 = vsel %vm635_vm6, %v3368_v62, %v3372_v50 }
 0x244   :  { %v639_v4 = vsel %vm635_vm6, %v3372_v50, %v3370_v40  ;;  %v619_v41 = vmul.f32 %v3371_v3, %v614_v13  ;;  %v622_v18 = vmul.f32 %v3371_v3, %v611_v53  ;;  %v662_v6 = vsel %vm660_vm7, %v2246_v27, %v3373_v61  ;;  %v2795_v40 = vpop.permute.xlu0 %803 }
 0x245   :  { %1016 = vrot.lane.b32.xlu1 %v1639_v46, %s1539_s20  ;;  %v663_v63 = vsel %vm660_vm7, %v3374_v19, %v2246_v27  ;;  %v645_v24 = vmul.f32 %v3375_v43, %v638_v59  ;;  %v646_v26 = vmul.f32 %v3375_v43, %v637_v2  ;;  %v661_v32 = vsel %vm660_vm7, %v3373_v61, %v2333_v31 }
 0x246   :  { %v664_v30 = vsel %vm660_vm7, %v2333_v31, %v3374_v19  ;;  %v598_v53 = vadd.f32 %v594_v17, %v573_v7  ;;  %v601_v13 = vadd.f32 %v597_v38, %v576_v5  ;;  %v644_v27 = vmul.f32 %v3375_v43, %v639_v4 }
 0x247   :  { %v2717_v37 = vpop.permute.xlu1 %770  ;;  %v647_v62 = vmul.f32 %v3375_v43, %v636_v25  ;;  %v624_v2 = vadd.f32 %v620_v48, %v599_v44  ;;  %v625_v59 = vadd.f32 %v621_v60, %v600_v15  ;;  %v670_v3 = vmul.f32 %v2228_v14, %v663_v63 }
 0x248   :  { %v671_v50 = vmul.f32 %v2228_v14, %v662_v6  ;;  %v623_v61 = vadd.f32 %v619_v41, %v598_v53  ;;  %v626_v22 = vadd.f32 %v622_v18, %v601_v13  ;;  %v669_v31 = vmul.f32 %v2228_v14, %v664_v30  ;;  %v3376_v18 = vld [vmem:[#allocation2_spill] sm:$0xff]  ;;  %v2819_v19 = vpop.permute.xlu0 %818 }
 0x249   :  { %1020 = vrot.lane.b32.xlu1 %v1643_v47, %s1539_s20  ;;  %v672_v7 = vmul.f32 %v2228_v14, %v661_v32  ;;  %v649_v5 = vadd.f32 %v645_v24, %v624_v2  ;;  %v650_v17 = vadd.f32 %v646_v26, %v625_v59  ;;  %v681_v14 = vmul.f32 %v2353_v10, %v1633_v42 }
 0x24a   :  { %v648_v44 = vadd.f32 %v644_v27, %v623_v61  ;;  %v651_v15 = vadd.f32 %v647_v62, %v626_v22  ;;  %v682_v25 = vmul.f32 %v2353_v10, %v1639_v46  ;;  %v683_v6 = vmul.f32 %v2353_v10, %v3376_v18 }
 0x24b   :  { %v2757_v49 = vpop.permute.xlu1 %789  ;;  %v674_v48 = vadd.f32 %v670_v3, %v649_v5  ;;  %v675_v60 = vadd.f32 %v671_v50, %v650_v17  ;;  %v684_v22 = vmul.f32 %v2353_v10, %v1643_v47  ;;  %v700_v63 = vsel %vm697_vm8, %v2399_v34, %v2283_v8 }
 0x24c   :  { %v673_v4 = vadd.f32 %v669_v31, %v648_v44  ;;  %v676_v41 = vadd.f32 %v672_v7, %v651_v15  ;;  %v699_v43 = vsel %vm697_vm8, %v2283_v8, %v2437_v21  ;;  %v724_v10 = vsel %vm722_vm9, %v2502_v58, %v2450_v28  ;;  %v829_v7 = vpop.permute.xlu0 %828 }
 0x24d   :  { %1039 = vrot.lane.b32.xlu1 %v1633_v42, %s1541_s21  ;;  %v725_v24 = vsel %vm722_vm9, %v2411_v23, %v2502_v58  ;;  %v701_v26 = vsel %vm697_vm8, %v2349_v9, %v2399_v34  ;;  %v698_v8 = vsel %vm697_vm8, %v2437_v21, %v2349_v9  ;;  %v706_v32 = vmul.f32 %v2461_v33, %v700_v63 }
 0x24e   :  { %v707_v30 = vmul.f32 %v2461_v33, %v699_v43  ;;  %v708_v13 = vmul.f32 %v2461_v33, %v698_v8  ;;  %v709_v58 = vmul.f32 %v2461_v33, %v701_v26  ;;  %v685_v27 = vadd.f32 %v681_v14, %v673_v4 }
 0x24f   :  { %v2793_v54 = vpop.permute.xlu1 %791  ;;  %v686_v62 = vadd.f32 %v682_v25, %v674_v48  ;;  %v731_v2 = vmul.f32 %v2514_v29, %v725_v24  ;;  %v732_v34 = vmul.f32 %v2514_v29, %v724_v10  ;;  %v749_v9 = vsel %vm747_vm10, %v2604_v1, %v2555_v57 }
 0x250   :  { %v750_v21 = vsel %vm747_vm10, %v2566_v45, %v2604_v1  ;;  %v687_v33 = vadd.f32 %v683_v6, %v675_v60  ;;  %v688_v59 = vadd.f32 %v684_v22, %v676_v41  ;;  %v710_v3 = vadd.f32 %v706_v32, %v685_v27 }
 0x251   :  { %1041 = vrot.lane.b32.xlu1 %v1639_v46, %s1541_s21  ;;  %v711_v50 = vadd.f32 %v707_v30, %v686_v62  ;;  %v723_v61 = vsel %vm722_vm9, %v2450_v28, %v2533_v52  ;;  %v726_v1 = vsel %vm722_vm9, %v2533_v52, %v2411_v23  ;;  %v756_v5 = vmul.f32 %v2608_v11, %v750_v21 }
 0x252   :  { %v757_v17 = vmul.f32 %v2608_v11, %v749_v9  ;;  %v774_v44 = vsel %vm772_vm11, %v2703_v12, %v2640_v56  ;;  %v775_v28 = vsel %vm772_vm11, %v2659_v39, %v2703_v12  ;;  %v735_v15 = vadd.f32 %v731_v2, %v710_v3 }
 0x253   :  { %v2807_v38 = vpop.permute.xlu1 %795  ;;  %v736_v48 = vadd.f32 %v732_v34, %v711_v50  ;;  %v712_v60 = vadd.f32 %v708_v13, %v687_v33  ;;  %v713_v23 = vadd.f32 %v709_v58, %v688_v59  ;;  %v733_v52 = vmul.f32 %v2514_v29, %v723_v61 }
 0x254   :  { %v734_v14 = vmul.f32 %v2514_v29, %v726_v1  ;;  %v748_v25 = vsel %vm747_vm10, %v2555_v57, %v2626_v55  ;;  %v751_v12 = vsel %vm747_vm10, %v2626_v55, %v2566_v45  ;;  %v781_v4 = vmul.f32 %v2705_v16, %v775_v28 }
 0x255   :  { %1045 = vrot.lane.b32.xlu1 %v1643_v47, %s1541_s21  ;;  %v782_v41 = vmul.f32 %v2705_v16, %v774_v44  ;;  %v799_v18 = vsel %vm797_vm12, %v2793_v54, %v2737_v35  ;;  %v800_v29 = vsel %vm797_vm12, %v2757_v49, %v2793_v54  ;;  %v760_v6 = vadd.f32 %v756_v5, %v735_v15 }
 0x256   :  { %v761_v22 = vadd.f32 %v757_v17, %v736_v48  ;;  %v773_v45 = vsel %vm772_vm11, %v2640_v56, %v2717_v37  ;;  %v776_v55 = vsel %vm772_vm11, %v2717_v37, %v2659_v39  ;;  %v758_v63 = vmul.f32 %v2608_v11, %v748_v25  ;;  %v844_v56 = vpop.permute.xlu0 %843 }
 0x257   :  { %v2847_v53 = vpop.permute.xlu1 %814  ;;  %v759_v43 = vmul.f32 %v2608_v11, %v751_v12  ;;  %v737_v24 = vadd.f32 %v733_v52, %v712_v60  ;;  %v738_v26 = vadd.f32 %v734_v14, %v713_v23  ;;  %v806_v39 = vmul.f32 %v2795_v40, %v800_v29 }
 0x258   :  { %v807_v37 = vmul.f32 %v2795_v40, %v799_v18  ;;  %v785_v8 = vadd.f32 %v781_v4, %v760_v6  ;;  %v786_v11 = vadd.f32 %v782_v41, %v761_v22  ;;  %v783_v32 = vmul.f32 %v2705_v16, %v773_v45 }
 0x259   :  { %1064 = vrot.lane.b32.xlu1 %v1633_v42, %s1543_s22  ;;  %v784_v30 = vmul.f32 %v2705_v16, %v776_v55  ;;  %v798_v58 = vsel %vm797_vm12, %v2737_v35, %v2807_v38  ;;  %v801_v27 = vsel %vm797_vm12, %v2807_v38, %v2757_v49  ;;  %v762_v34 = vadd.f32 %v758_v63, %v737_v24 }
 0x25a   :  { %v763_v9 = vadd.f32 %v759_v43, %v738_v26  ;;  %v810_v16 = vadd.f32 %v806_v39, %v785_v8  ;;  %v811_v21 = vadd.f32 %v807_v37, %v786_v11  ;;  %v808_v59 = vmul.f32 %v2795_v40, %v798_v58  ;;  %v854_v61 = vpop.permute.xlu0 %853 }
 0x25b   :  { %v817_v31 = vpop.permute.xlu1 %816  ;;  %v787_v49 = vadd.f32 %v783_v32, %v762_v34  ;;  %v809_v3 = vmul.f32 %v2795_v40, %v801_v27  ;;  %vm922_vm1 = vcmp.lt.s32.totalorder %v2169_v36, 103  ;;  %vm947_vm2 = vcmp.lt.s32.totalorder %v2169_v36, 87 }
 0x25c   :  { %v824_v54 = vsel %vm822_vm13, %v817_v31, %v2819_v19  ;;  %v825_v10 = vsel %vm822_vm13, %v2847_v53, %v817_v31  ;;  %v788_v38 = vadd.f32 %v784_v30, %v763_v9  ;;  %vm972_vm3 = vcmp.lt.s32.totalorder %v2169_v36, 86 }
 0x25d   :  { %1066 = vrot.lane.b32.xlu1 %v1639_v46, %s1543_s22  ;;  %v831_v62 = vmul.f32 %v829_v7, %v825_v10  ;;  %v832_v2 = vmul.f32 %v829_v7, %v824_v54  ;;  %v812_v15 = vadd.f32 %v808_v59, %v787_v49  ;;  %v1558_v54 = vmov 45  }
 0x25e   :  { %v813_v48 = vadd.f32 %v809_v3, %v788_v38  ;;  %v869_v41 = vpop.permute.xlu0 %868  ;;  %vm997_vm4 = vcmp.lt.s32.totalorder %v2169_v36, 85  ;;  %vm1022_vm5 = vcmp.lt.s32.totalorder %v2169_v36, 84  ;;  %vm1047_vm6 = vcmp.lt.s32.totalorder %v2169_v36, 83 }
 0x25f   :  { %v821_v57 = vpop.permute.xlu1 %820  ;;  %v835_v1 = vadd.f32 %v831_v62, %v810_v16  ;;  %v836_v31 = vadd.f32 %v832_v2, %v811_v21  ;;  %vm1072_vm7 = vcmp.lt.s32.totalorder %v2169_v36, 82  ;;  %vm1097_vm8 = vcmp.lt.s32.totalorder %v2169_v36, 81 }
 0x260   :  { %v823_v35 = vsel %vm822_vm13, %v2819_v19, %v821_v57  ;;  %v826_v33 = vsel %vm822_vm13, %v821_v57, %v2847_v53  ;;  %vm1158_vm9 = vcmp.lt.s32.totalorder %v2169_v36, 62  ;;  %vm1183_vm10 = vcmp.lt.s32.totalorder %v2169_v36, 61 }
 0x261   :  { %1070 = vrot.lane.b32.xlu1 %v1643_v47, %s1543_s22  ;;  %v833_v17 = vmul.f32 %v829_v7, %v823_v35  ;;  %v834_v44 = vmul.f32 %v829_v7, %v826_v33  ;;  %vm1208_vm11 = vcmp.lt.s32.totalorder %v2169_v36, 60  ;;  %vm1233_vm12 = vcmp.lt.s32.totalorder %v2169_v36, 59 }
 0x262   :  { %v879_v22 = vpop.permute.xlu0 %878 }
 0x263   :  { %v840_v13 = vpop.permute.xlu1 %839  ;;  %v837_v25 = vadd.f32 %v833_v17, %v812_v15  ;;  %v838_v12 = vadd.f32 %v834_v44, %v813_v48 }
 0x265   :  { %1089 = vrot.lane.b32.xlu1 %v1633_v42, %s1546_s23 }
 0x266   :  { %v894_v11 = vpop.permute.xlu0 %893 }
 0x267   :  { %v842_v50 = vpop.permute.xlu1 %841 }
 0x268   :  { %v849_v5 = vsel %vm847_vm14, %v842_v50, %v844_v56  ;;  %v850_v19 = vsel %vm847_vm14, %v840_v13, %v842_v50 }
 0x269   :  { %v856_v28 = vmul.f32 %v854_v61, %v850_v19  ;;  %v857_v53 = vmul.f32 %v854_v61, %v849_v5  ;;  %1091 = vrot.lane.b32.xlu1 %v1639_v46, %s1546_s23 }
 0x26a   :  { %v904_v58 = vpop.permute.xlu0 %903 }
 0x26b   :  { %v860_v40 = vadd.f32 %v856_v28, %v835_v1  ;;  %v861_v60 = vadd.f32 %v857_v53, %v836_v31  ;;  %v846_v23 = vpop.permute.xlu1 %845 }
 0x26c   :  { %v848_v52 = vsel %vm847_vm14, %v844_v56, %v846_v23  ;;  %v851_v14 = vsel %vm847_vm14, %v846_v23, %v840_v13 }
 0x26d   :  { %v858_v4 = vmul.f32 %v854_v61, %v848_v52  ;;  %v859_v7 = vmul.f32 %v854_v61, %v851_v14  ;;  %1095 = vrot.lane.b32.xlu1 %v1643_v47, %s1546_s23 }
 0x26e   :  { %v919_v59 = vpop.permute.xlu0 %918 }
 0x26f   :  { %v862_v18 = vadd.f32 %v858_v4, %v837_v25  ;;  %v863_v29 = vadd.f32 %v859_v7, %v838_v12  ;;  %v865_v57 = vpop.permute.xlu1 %864 }
 0x271   :  { %1139 = vperm.xlu1 %1438, %v2540_v51  }
 0x272   :  { %v929_v31 = vpop.permute.xlu0 %928 }
 0x273   :  { %v867_v6 = vpop.permute.xlu1 %866 }
 0x274   :  { %v874_v45 = vsel %vm872_vm15, %v867_v6, %v869_v41  ;;  %v875_v55 = vsel %vm872_vm15, %v865_v57, %v867_v6 }
 0x275   :  { %v881_v63 = vmul.f32 %v879_v22, %v875_v55  ;;  %v882_v43 = vmul.f32 %v879_v22, %v874_v45  ;;  %1439 = vset.pattern.permute.xlu1 %v1558_v54 }
 0x276   :  { %1164 = vperm.xlu1 %1439, %v2540_v51   ;;  %v944_v52 = vpop.permute.xlu0 %943 }
 0x277   :  { %v885_v10 = vadd.f32 %v881_v63, %v860_v40  ;;  %v886_v56 = vadd.f32 %v882_v43, %v861_v60  ;;  %v871_v24 = vpop.permute.xlu1 %870 }
 0x278   :  { %v873_v26 = vsel %vm872_vm15, %v869_v41, %v871_v24  ;;  %v876_v39 = vsel %vm872_vm15, %v871_v24, %v865_v57 }
 0x279   :  { %v883_v37 = vmul.f32 %v879_v22, %v873_v26  ;;  %v884_v8 = vmul.f32 %v879_v22, %v876_v39 }
 0x27a   :  { %1150 = vrot.lane.b32.xlu1 %v1633_v42, %s1550_s24  ;;  %v954_v7 = vpop.permute.xlu0 %953 }
 0x27b   :  { %v887_v32 = vadd.f32 %v883_v37, %v862_v18  ;;  %v888_v30 = vadd.f32 %v884_v8, %v863_v29  ;;  %v890_v13 = vpop.permute.xlu1 %889 }
 0x27e   :  { %1152 = vrot.lane.b32.xlu1 %v1639_v46, %s1550_s24  ;;  %v969_v54 = vpop.permute.xlu0 %968 }
 0x27f   :  { %v892_v51 = vpop.permute.xlu1 %891 }
 0x280   :  { %v899_v27 = vsel %vm897_vm0, %v892_v51, %v894_v11  ;;  %v900_v62 = vsel %vm897_vm0, %v890_v13, %v892_v51 }
 0x281   :  { %v906_v2 = vmul.f32 %v904_v58, %v900_v62  ;;  %v907_v34 = vmul.f32 %v904_v58, %v899_v27 }
 0x282   :  { %1156 = vrot.lane.b32.xlu1 %v1643_v47, %s1550_s24  ;;  %v979_v39 = vpop.permute.xlu0 %978 }
 0x283   :  { %v910_v9 = vadd.f32 %v906_v2, %v885_v10  ;;  %v911_v16 = vadd.f32 %v907_v34, %v886_v56  ;;  %v896_v21 = vpop.permute.xlu1 %895 }
 0x284   :  { %v898_v35 = vsel %vm897_vm0, %v894_v11, %v896_v21  ;;  %v901_v33 = vsel %vm897_vm0, %v896_v21, %v890_v13 }
 0x285   :  { %v908_v49 = vmul.f32 %v904_v58, %v898_v35  ;;  %v909_v38 = vmul.f32 %v904_v58, %v901_v33 }
 0x286   :  { %1175 = vrot.lane.b32.xlu1 %v1633_v42, %s1552_s25 }
 0x287   :  { %v912_v3 = vadd.f32 %v908_v49, %v887_v32  ;;  %v913_v50 = vadd.f32 %v909_v38, %v888_v30  ;;  %v915_v61 = vpop.permute.xlu1 %914 }
 0x28a   :  { %1177 = vrot.lane.b32.xlu1 %v1639_v46, %s1552_s25 }
 0x28b   :  { %v917_v1 = vpop.permute.xlu1 %916 }
 0x28c   :  { %v924_v5 = vsel %vm922_vm1, %v917_v1, %v919_v59  ;;  %v925_v19 = vsel %vm922_vm1, %v915_v61, %v917_v1 }
 0x28d   :  { %v931_v17 = vmul.f32 %v929_v31, %v925_v19  ;;  %v932_v44 = vmul.f32 %v929_v31, %v924_v5 }
 0x28e   :  { %1181 = vrot.lane.b32.xlu1 %v1643_v47, %s1552_s25 }
 0x28f   :  { %v935_v28 = vadd.f32 %v931_v17, %v910_v9  ;;  %v936_v53 = vadd.f32 %v932_v44, %v911_v16  ;;  %v921_v15 = vpop.permute.xlu1 %920  ;;  %v990_v16 = vpop.permute.xlu0 %989 }
 0x290   :  { %v923_v48 = vsel %vm922_vm1, %v919_v59, %v921_v15  ;;  %v926_v40 = vsel %vm922_vm1, %v921_v15, %v915_v61 }
 0x291   :  { %v933_v60 = vmul.f32 %v929_v31, %v923_v48  ;;  %v934_v23 = vmul.f32 %v929_v31, %v926_v40 }
 0x292   :  { %1200 = vrot.lane.b32.xlu1 %v1633_v42, %s1554_s26 }
 0x293   :  { %v937_v14 = vadd.f32 %v933_v60, %v912_v3  ;;  %v938_v25 = vadd.f32 %v934_v23, %v913_v50  ;;  %v940_v12 = vpop.permute.xlu1 %939  ;;  %v994_v35 = vpop.permute.xlu0 %993 }
 0x296   :  { %1202 = vrot.lane.b32.xlu1 %v1639_v46, %s1554_s26 }
 0x297   :  { %v942_v4 = vpop.permute.xlu1 %941  ;;  %v2988_v3 = vpop.permute.xlu0 %1053 }
 0x298   :  { %v949_v41 = vsel %vm947_vm2, %v942_v4, %v944_v52  ;;  %v950_v18 = vsel %vm947_vm2, %v940_v12, %v942_v4 }
 0x299   :  { %v956_v29 = vmul.f32 %v954_v7, %v950_v18  ;;  %v957_v57 = vmul.f32 %v954_v7, %v949_v41 }
 0x29a   :  { %1206 = vrot.lane.b32.xlu1 %v1643_v47, %s1554_s26 }
 0x29b   :  { %v960_v6 = vadd.f32 %v956_v29, %v935_v28  ;;  %v961_v22 = vadd.f32 %v957_v57, %v936_v53  ;;  %v946_v42 = vpop.permute.xlu1 %945  ;;  %v1019_v15 = vpop.permute.xlu0 %1018 }
 0x29c   :  { %v948_v45 = vsel %vm947_vm2, %v944_v52, %v946_v42  ;;  %v951_v55 = vsel %vm947_vm2, %v946_v42, %v940_v12 }
 0x29d   :  { %v958_v63 = vmul.f32 %v954_v7, %v948_v45  ;;  %v959_v43 = vmul.f32 %v954_v7, %v951_v55 }
 0x29e   :  { %1227 = vrot.lane.b32.xlu1 %v1639_v46, %s1555_s3 }
 0x29f   :  { %v962_v10 = vadd.f32 %v958_v63, %v937_v14  ;;  %v963_v56 = vadd.f32 %v959_v43, %v938_v25  ;;  %v965_v24 = vpop.permute.xlu1 %964  ;;  %v1079_v14 = vpop.permute.xlu0 %1078 }
 0x2a2   :  { %1231 = vrot.lane.b32.xlu1 %v1643_v47, %s1555_s3 }
 0x2a3   :  { %v967_v26 = vpop.permute.xlu1 %966  ;;  %v1044_v42 = vpop.permute.xlu0 %1043 }
 0x2a4   :  { %v974_v37 = vsel %vm972_vm3, %v967_v26, %v969_v54  ;;  %v975_v8 = vsel %vm972_vm3, %v965_v24, %v967_v26 }
 0x2a5   :  { %v981_v11 = vmul.f32 %v979_v39, %v975_v8  ;;  %v982_v32 = vmul.f32 %v979_v39, %v974_v37 }
 0x2a7   :  { %v985_v30 = vadd.f32 %v981_v11, %v960_v6  ;;  %v986_v13 = vadd.f32 %v982_v32, %v961_v22  ;;  %v971_v51 = vpop.permute.xlu1 %970  ;;  %v1104_v55 = vpop.permute.xlu0 %1103 }
 0x2a8   :  { %v973_v58 = vsel %vm972_vm3, %v969_v54, %v971_v51  ;;  %v976_v27 = vsel %vm972_vm3, %v971_v51, %v965_v24 }
 0x2a9   :  { %v983_v46 = vmul.f32 %v979_v39, %v973_v58  ;;  %v984_v62 = vmul.f32 %v979_v39, %v976_v27 }
 0x2ab   :  { %v987_v2 = vadd.f32 %v983_v46, %v962_v10  ;;  %v988_v34 = vadd.f32 %v984_v62, %v963_v56  ;;  %v1004_v9 = vpop.permute.xlu1 %1003  ;;  %v1069_v24 = vpop.permute.xlu0 %1068 }
 0x2af   :  { %v1116_v39 = vpop.permute.xlu0 %1115 }
 0x2b0   :  { %v1029_v21 = vpop.permute.xlu1 %1028 }
 0x2b3   :  { %v1094_v11 = vpop.permute.xlu0 %1093 }
 0x2b4   :  { %v992_v47 = vpop.permute.xlu1 %991 }
 0x2b5   :  { %v999_v33 = vsel %vm997_vm4, %v992_v47, %v994_v35  ;;  %v1000_v49 = vsel %vm997_vm4, %v990_v16, %v992_v47 }
 0x2b6   :  { %v1006_v38 = vmul.f32 %v1004_v9, %v1000_v49  ;;  %v1007_v59 = vmul.f32 %v1004_v9, %v999_v33 }
 0x2b8   :  { %v1010_v50 = vadd.f32 %v1006_v38, %v985_v30  ;;  %v1011_v61 = vadd.f32 %v1007_v59, %v986_v13  ;;  %v996_v1 = vpop.permute.xlu1 %995  ;;  %v2995_v30 = vpop.permute.xlu0 %1127 }
 0x2b9   :  { %v998_v31 = vsel %vm997_vm4, %v994_v35, %v996_v1  ;;  %v1001_v5 = vsel %vm997_vm4, %v996_v1, %v990_v16 }
 0x2ba   :  { %v1008_v19 = vmul.f32 %v1004_v9, %v998_v31  ;;  %v1009_v17 = vmul.f32 %v1004_v9, %v1001_v5 }
 0x2bc   :  { %v1012_v44 = vadd.f32 %v1008_v19, %v987_v2  ;;  %v1013_v28 = vadd.f32 %v1009_v17, %v988_v34  ;;  %v1015_v53 = vpop.permute.xlu1 %1014  ;;  %v2999_v58 = vpop.permute.xlu0 %1189 }
 0x2c0   :  { %v1017_v48 = vpop.permute.xlu1 %1016  ;;  %v3003_v46 = vpop.permute.xlu0 %1154 }
 0x2c1   :  { %v1024_v40 = vsel %vm1022_vm5, %v1017_v48, %v1019_v15  ;;  %v1025_v60 = vsel %vm1022_vm5, %v1015_v53, %v1017_v48 }
 0x2c2   :  { %v1031_v23 = vmul.f32 %v1029_v21, %v1025_v60  ;;  %v1032_v52 = vmul.f32 %v1029_v21, %v1024_v40 }
 0x2c4   :  { %v1035_v25 = vadd.f32 %v1031_v23, %v1010_v50  ;;  %v1036_v12 = vadd.f32 %v1032_v52, %v1011_v61  ;;  %v1021_v4 = vpop.permute.xlu1 %1020  ;;  %v3009_v34 = vpop.permute.xlu0 %1214 }
 0x2c5   :  { %v1023_v7 = vsel %vm1022_vm5, %v1019_v15, %v1021_v4  ;;  %v1026_v41 = vsel %vm1022_vm5, %v1021_v4, %v1015_v53 }
 0x2c6   :  { %v1033_v18 = vmul.f32 %v1029_v21, %v1023_v7  ;;  %v1034_v29 = vmul.f32 %v1029_v21, %v1026_v41 }
 0x2c8   :  { %v1037_v57 = vadd.f32 %v1033_v18, %v1012_v44  ;;  %v1038_v6 = vadd.f32 %v1034_v29, %v1013_v28  ;;  %v1040_v22 = vpop.permute.xlu1 %1039  ;;  %v3025_v61 = vpop.permute.xlu0 %1179 }
 0x2cc   :  { %v1042_v45 = vpop.permute.xlu1 %1041  ;;  %v3034_v29 = vpop.permute.xlu0 %1239 }
 0x2cd   :  { %v1049_v9 = vsel %vm1047_vm6, %v1042_v45, %v1044_v42  ;;  %v1050_v16 = vsel %vm1047_vm6, %v1040_v22, %v1042_v45  ;;  %v1118_v45 = vmul.f32 %v1116_v39, %v2267_v20  ;;  %v3381_v20 = vld [vmem:[#allocation74_spill] sm:$0xff] }
 0x2ce   :  { %v1056_v21 = vmul.f32 %v2988_v3, %v1050_v16  ;;  %v1057_v35 = vmul.f32 %v2988_v3, %v1049_v9 }
 0x2d0   :  { %v1046_v63 = vpop.permute.xlu1 %1045  ;;  %v1060_v17 = vadd.f32 %v1056_v21, %v1035_v25  ;;  %v1061_v44 = vadd.f32 %v1057_v35, %v1036_v12  ;;  %v3382_v35 = vld [vmem:[#allocation75_spill] sm:$0xff] }
 0x2d1   :  { %v1051_v43 = vsel %vm1047_vm6, %v1046_v63, %v1040_v22  ;;  %v1048_v38 = vsel %vm1047_vm6, %v1044_v42, %v1046_v63  ;;  %v1119_v63 = vmul.f32 %v1116_v39, %v2261_v0  ;;  %v1132_v0 = vmul.f32 %v2995_v30, %v3381_v20 }
 0x2d2   :  { %v1059_v54 = vmul.f32 %v2988_v3, %v1051_v43  ;;  %v1058_v28 = vmul.f32 %v2988_v3, %v1048_v38  ;;  %v3383_v38 = vld [vmem:[#allocation77_spill] sm:$0xff] }
 0x2d4   :  { %v1063_v10 = vadd.f32 %v1059_v54, %v1038_v6  ;;  %v1065_v56 = vpop.permute.xlu1 %1064  ;;  %v1062_v41 = vadd.f32 %v1058_v28, %v1037_v57 }
 0x2d8   :  { %v1067_v26 = vpop.permute.xlu1 %1066 }
 0x2d9   :  { %v1074_v47 = vsel %vm1072_vm7, %v1067_v26, %v1069_v24  ;;  %v1075_v33 = vsel %vm1072_vm7, %v1065_v56, %v1067_v26  ;;  %v3377_v26 = vld [vmem:[#allocation70_spill] sm:$0xff] }
 0x2da   :  { %v1081_v1 = vmul.f32 %v1079_v14, %v1075_v33  ;;  %v1082_v31 = vmul.f32 %v1079_v14, %v1074_v47  ;;  %v1120_v57 = vmul.f32 %v1116_v39, %v3377_v26  ;;  %v1133_v47 = vmul.f32 %v2995_v30, %v3382_v35 }
 0x2dc   :  { %v1071_v37 = vpop.permute.xlu1 %1070  ;;  %v1085_v4 = vadd.f32 %v1081_v1, %v1060_v17  ;;  %v1086_v7 = vadd.f32 %v1082_v31, %v1061_v44 }
 0x2dd   :  { %v1073_v5 = vsel %vm1072_vm7, %v1069_v24, %v1071_v37  ;;  %v1076_v19 = vsel %vm1072_vm7, %v1071_v37, %v1065_v56  ;;  %v3378_v37 = vld [vmem:[#allocation71_spill] sm:$0xff] }
 0x2de   :  { %v1083_v23 = vmul.f32 %v1079_v14, %v1073_v5  ;;  %v1084_v52 = vmul.f32 %v1079_v14, %v1076_v19 }
 0x2e0   :  { %v1090_v8 = vpop.permute.xlu1 %1089  ;;  %v1087_v22 = vadd.f32 %v1083_v23, %v1062_v41  ;;  %v1088_v42 = vadd.f32 %v1084_v52, %v1063_v10  ;;  %v1205_v10 = vpop.permute.xlu0 %1204  ;;  %v3385_v23 = vld [vmem:[#allocation78_spill] sm:$0xff]  ;;  %v3386_v52 = vld [vmem:[#allocation79_spill] sm:$0xff] }
 0x2e4   :  { %v1092_v32 = vpop.permute.xlu1 %1091 }
 0x2e5   :  { %v1099_v59 = vsel %vm1097_vm8, %v1092_v32, %v1094_v11  ;;  %v1100_v50 = vsel %vm1097_vm8, %v1090_v8, %v1092_v32  ;;  %v3380_v32 = vld [vmem:[#allocation72_spill] sm:$0xff] }
 0x2e6   :  { %v1106_v15 = vmul.f32 %v1104_v55, %v1100_v50  ;;  %v1107_v48 = vmul.f32 %v1104_v55, %v1099_v59  ;;  %v3384_v50 = vld [vmem:[#allocation76_spill] sm:$0xff] }
 0x2e8   :  { %v1096_v13 = vpop.permute.xlu1 %1095  ;;  %v1110_v3 = vadd.f32 %v1106_v15, %v1085_v4  ;;  %v1111_v6 = vadd.f32 %v1107_v48, %v1086_v7  ;;  %v1226_v15 = vpop.permute.xlu0 %1225 }
 0x2e9   :  { %v1098_v40 = vsel %vm1097_vm8, %v1094_v11, %v1096_v13  ;;  %v1101_v60 = vsel %vm1097_vm8, %v1096_v13, %v1090_v8  ;;  %v3379_v8 = vld [vmem:[#allocation73_spill] sm:$0xff]  ;;  %v1131_v13 = vmul.f32 %v2995_v30, %v3380_v32 }
 0x2ea   :  { %v1108_v18 = vmul.f32 %v1104_v55, %v1098_v40  ;;  %v1109_v25 = vmul.f32 %v1104_v55, %v1101_v60  ;;  %v1122_v14 = vadd.f32 %v1118_v45, %v1110_v3  ;;  %v1123_v24 = vadd.f32 %v1119_v63, %v1111_v6 }
 0x2eb   :  { %v1121_v55 = vmul.f32 %v1116_v39, %v3378_v37  ;;  %v1130_v11 = vmul.f32 %v2995_v30, %v3379_v8 }
 0x2ec   :  { %v2997_v51 = vpop.permute.xlu1 %1139  ;;  %v1112_v43 = vadd.f32 %v1108_v18, %v1087_v22  ;;  %v1113_v54 = vadd.f32 %v1109_v25, %v1088_v42  ;;  %v1135_v39 = vadd.f32 %v1131_v13, %v1123_v24 }
 0x2ed   :  { %v1134_v33 = vadd.f32 %v1130_v11, %v1122_v14  ;;  %v1142_v59 = vmul.f32 %v2997_v51, %v3383_v38  ;;  %v1143_v1 = vmul.f32 %v2997_v51, %v3384_v50 }
 0x2ee   :  { %v1124_v9 = vadd.f32 %v1120_v57, %v1112_v43  ;;  %v1125_v16 = vadd.f32 %v1121_v55, %v1113_v54 }
 0x2ef   :  { %v1147_v4 = vadd.f32 %v1143_v1, %v1135_v39 }
 0x2f0   :  { %v1136_v5 = vadd.f32 %v1132_v0, %v1124_v9  ;;  %v1137_v19 = vadd.f32 %v1133_v47, %v1125_v16 }
 0x2f1   :  { %v3001_v27 = vpop.permute.xlu1 %1164 }
 0x2f5   :  { %v3005_v62 = vpop.permute.xlu1 %1150 }
 0x2f9   :  { %v3007_v2 = vpop.permute.xlu1 %1152 }
 0x2fa   :  { %v1160_v31 = vsel %vm1158_vm9, %v3007_v2, %v3003_v46  ;;  %v1161_v30 = vsel %vm1158_vm9, %v3005_v62, %v3007_v2 }
 0x2fb   :  { %v1167_v48 = vmul.f32 %v3001_v27, %v1161_v30  ;;  %v1168_v2 = vmul.f32 %v3001_v27, %v1160_v31 }
 0x2fd   :  { %v1157_v49 = vpop.permute.xlu1 %1156  ;;  %v1172_v42 = vadd.f32 %v1168_v2, %v1147_v4 }
 0x2fe   :  { %v1159_v17 = vsel %vm1158_vm9, %v3003_v46, %v1157_v49  ;;  %v1162_v44 = vsel %vm1158_vm9, %v1157_v49, %v3005_v62  ;;  %v1144_v46 = vmul.f32 %v2997_v51, %v3385_v23  ;;  %v1145_v62 = vmul.f32 %v2997_v51, %v3386_v52 }
 0x2ff   :  { %v1146_v49 = vadd.f32 %v1142_v59, %v1134_v33  ;;  %v1169_v7 = vmul.f32 %v3001_v27, %v1159_v17  ;;  %v1170_v41 = vmul.f32 %v3001_v27, %v1162_v44 }
 0x300   :  { %v1148_v45 = vadd.f32 %v1144_v46, %v1136_v5  ;;  %v1149_v63 = vadd.f32 %v1145_v62, %v1137_v19 }
 0x301   :  { %v3028_v53 = vpop.permute.xlu1 %1175  ;;  %v1171_v27 = vadd.f32 %v1167_v48, %v1146_v49 }
 0x302   :  { %v1174_v57 = vadd.f32 %v1170_v41, %v1149_v63  ;;  %v1461_v41 = vld [vmem:[%s3145_s0] sm:$0xff] }
 0x305   :  { %v1178_v12 = vpop.permute.xlu1 %1177 }
 0x306   :  { %v1185_v40 = vsel %vm1183_vm10, %v1178_v12, %v3025_v61  ;;  %v1186_v60 = vsel %vm1183_vm10, %v3028_v53, %v1178_v12 }
 0x307   :  { %v1192_v12 = vmul.f32 %v2999_v58, %v1186_v60  ;;  %v1193_v3 = vmul.f32 %v2999_v58, %v1185_v40 }
 0x309   :  { %v1182_v56 = vpop.permute.xlu1 %1181  ;;  %v1196_v37 = vadd.f32 %v1192_v12, %v1171_v27  ;;  %v1197_v55 = vadd.f32 %v1193_v3, %v1172_v42  ;;  %v1464_v27 = vld [vmem:[%s3145_s0 + $0x18] sm:$0xff] }
 0x30a   :  { %v1184_v51 = vsel %vm1183_vm10, %v3025_v61, %v1182_v56  ;;  %v1187_v6 = vsel %vm1183_vm10, %v1182_v56, %v3028_v53  ;;  %v1230_v61 = vpop.permute.xlu0 %1229  ;;  %v1173_v56 = vadd.f32 %v1169_v7, %v1148_v45 }
 0x30b   :  { %v1194_v26 = vmul.f32 %v2999_v58, %v1184_v51  ;;  %v1195_v53 = vmul.f32 %v2999_v58, %v1187_v6  ;;  %v1463_v6 = vld [vmem:[%s3145_s0 + $0x10] sm:$0xff] }
 0x30d   :  { %v1201_v21 = vpop.permute.xlu1 %1200  ;;  %v1198_v16 = vadd.f32 %v1194_v26, %v1173_v56 }
 0x30e   :  { %v1254_v35 = vpop.permute.xlu0 %1253 }
 0x311   :  { %v1203_v28 = vpop.permute.xlu1 %1202 }
 0x312   :  { %v1210_v18 = vsel %vm1208_vm11, %v1203_v28, %v1205_v10  ;;  %v1211_v25 = vsel %vm1208_vm11, %v1201_v21, %v1203_v28 }
 0x313   :  { %v1217_v43 = vmul.f32 %v3009_v34, %v1211_v25  ;;  %v1218_v54 = vmul.f32 %v3009_v34, %v1210_v18  ;;  %v1462_v25 = vld [vmem:[%s3145_s0 + $0x8] sm:$0xff] }
 0x315   :  { %v1207_v22 = vpop.permute.xlu1 %1206  ;;  %v1221_v20 = vadd.f32 %v1217_v43, %v1196_v37  ;;  %v1222_v0 = vadd.f32 %v1218_v54, %v1197_v55 }
 0x316   :  { %v1209_v14 = vsel %vm1208_vm11, %v1205_v10, %v1207_v22  ;;  %v1212_v24 = vsel %vm1208_vm11, %v1207_v22, %v1201_v21  ;;  %v1199_v21 = vadd.f32 %v1195_v53, %v1174_v57 }
 0x317   :  { %v1219_v11 = vmul.f32 %v3009_v34, %v1209_v14  ;;  %v1220_v32 = vmul.f32 %v3009_v34, %v1212_v24 }
 0x319   :  { %v1228_v8 = vpop.permute.xlu1 %1227  ;;  %v1223_v38 = vadd.f32 %v1219_v11, %v1198_v16  ;;  %v1224_v34 = vadd.f32 %v1220_v32, %v1199_v21 }
 0x31a   :  { %v1235_v13 = vsel %vm1233_vm12, %v1228_v8, %v1230_v61  ;;  %v1236_v10 = vsel %vm1233_vm12, %v1226_v15, %v1228_v8 }
 0x31b   :  { %v1242_v9 = vmul.f32 %v3034_v29, %v1236_v10  ;;  %v1243_v58 = vmul.f32 %v3034_v29, %v1235_v13 }
 0x31d   :  { %v1246_v47 = vadd.f32 %v1242_v9, %v1221_v20  ;;  %v1247_v33 = vadd.f32 %v1243_v58, %v1222_v0  ;;  %v1232_v39 = vpop.permute.xlu1 %1231 }
 0x31e   :  { %v1234_v59 = vsel %vm1233_vm12, %v1230_v61, %v1232_v39  ;;  %v1237_v50 = vsel %vm1233_vm12, %v1232_v39, %v1226_v15 }
 0x31f   :  { %v1244_v1 = vmul.f32 %v3034_v29, %v1234_v59  ;;  %v1245_v31 = vmul.f32 %v3034_v29, %v1237_v50  ;;  %v1256_v30 = vadd.f32 %v1254_v35, %v1246_v47  ;;  %v1257_v5 = vadd.f32 %v1254_v35, %v1247_v33 }
 0x321   :  { %v1248_v19 = vadd.f32 %v1244_v1, %v1223_v38  ;;  %v1249_v17 = vadd.f32 %v1245_v31, %v1224_v34  ;;  %v1296_v44 = vmul.f32 -1.442695, %v1256_v30  ;;  %v1297_v28 = vmul.f32 -1.442695, %v1257_v5 }
 0x323   :  { %v1258_v48 = vadd.f32 %v1254_v35, %v1248_v19  ;;  %v1259_v2 = vadd.f32 %v1254_v35, %v1249_v17  ;;  %1444 = vpow2.f32 %v1296_v44 }
 0x324   :  { %1446 = vpow2.f32 %v1297_v28 }
 0x325   :  { %v1298_v40 = vmul.f32 -1.442695, %v1258_v48  ;;  %v1299_v60 = vmul.f32 -1.442695, %v1259_v2 }
 0x327   :  { %1448 = vpow2.f32 %v1298_v40 }
 0x328   :  { %1450 = vpow2.f32 %v1299_v60 }
 0x330   :  { %v1445_v36 = vpop.eup %1444 }
 0x331   :  { %v1447_v15 = vpop.eup %1446  ;;  %v1272_v23 = vadd.f32 1.0, %v1445_v36 }
 0x332   :  { %v1273_v46 = vadd.f32 1.0, %v1447_v15 }
 0x333   :  { %1452 = vrcp.f32 %v1272_v23 }
 0x334   :  { %v1449_v29 = vpop.eup %1448  ;;  %1454 = vrcp.f32 %v1273_v46 }
 0x335   :  { %v1451_v52 = vpop.eup %1450  ;;  %v1274_v62 = vadd.f32 1.0, %v1449_v29 }
 0x336   :  { %v1275_v49 = vadd.f32 1.0, %v1451_v52 }
 0x337   :  { %1456 = vrcp.f32 %v1274_v62 }
 0x338   :  { %1458 = vrcp.f32 %v1275_v49 }
 0x340   :  { %v1453_v4 = vpop.eup %1452 }
 0x341   :  { %v1455_v7 = vpop.eup %1454  ;;  %v1284_v18 = vmul.f32 %v1461_v41, %v1453_v4 }
 0x342   :  { %v1285_v12 = vmul.f32 %v1462_v25, %v1455_v7 }
 0x343   :  { %1288 = vst [vmem:[%s3148_s6] sm:$0xff] %v1284_v18 }
 0x344   :  { %v1457_v3 = vpop.eup %1456  ;;  %1289 = vst [vmem:[%s3148_s6 + $0x8] sm:$0xff] %v1285_v12 }
 0x345   :  { %v1459_v51 = vpop.eup %1458  ;;  %v1286_v22 = vmul.f32 %v1463_v6, %v1457_v3 }
 0x346   :  { %v1287_v42 = vmul.f32 %v1464_v27, %v1459_v51 }
 0x347   :  { %1290 = vst [vmem:[%s3148_s6 + $0x10] sm:$0xff] %v1286_v22 }
 0x348   :  { %1291 = vst [vmem:[%s3148_s6 + $0x18] sm:$0xff] %v1287_v42 }

</bundles_post_ra>
